<compile_context>
chip_gen: v6e
topology: v6e:2x2x1
jax: 0.10.0
libtpu: 0.0.40
codegen_flags: <defaults>
</compile_context>

<pallas_src>
import functools

import jax
import jax.numpy as jnp
import numpy as np
from jax.experimental import pallas as pl
from jax.experimental.pallas import tpu as pltpu


# ------------------------------ Fused kernel --------------------------------
def cbam_kernel(x_ref, w1_ref, b1_ref, w2_ref, b2_ref, mask_ref,
                wsp_ref, bsp_ref, out_ref, *, H, W):
    HW = H * W
    x = x_ref[0]                                        # (C, HW), HW on lanes
    hp = jax.lax.Precision.HIGHEST

    # ---- channel attention: global avg/max pool + shared MLP + sigmoid ----
    avg_c = jnp.mean(x, axis=1, keepdims=True)          # (C, 1)
    max_c = jnp.max(x, axis=1, keepdims=True)           # (C, 1)

    def mlp(col):                                       # shared fc1->relu->fc2
        h = jnp.dot(w1_ref[...], col, precision=hp,
                    preferred_element_type=jnp.float32) + b1_ref[...]
        h = jnp.maximum(h, 0.0)
        return jnp.dot(w2_ref[...], h, precision=hp,
                       preferred_element_type=jnp.float32) + b2_ref[...]

    att_c = jax.nn.sigmoid(mlp(avg_c) + mlp(max_c))     # (C, 1)
    xca = x * att_c                                     # lane broadcast

    # ---- spatial attention: per-pixel mean/max over C + 3x3 conv ----------
    avg_sp = jnp.mean(xca, axis=0, keepdims=True)       # (1, HW)
    max_sp = jnp.max(xca, axis=0, keepdims=True)        # (1, HW)

    pad = jnp.zeros((1, W + 1), jnp.float32)
    pa = jnp.concatenate([pad, avg_sp, pad], axis=1)    # (1, HW + 2W + 2)
    pm = jnp.concatenate([pad, max_sp, pad], axis=1)

    mask_l = mask_ref[0:1, :]                           # 0 where w == 0
    mask_r = mask_ref[1:2, :]                           # 0 where w == W - 1

    acc = jnp.zeros((1, HW), jnp.float32)
    for ky in range(3):                                 # fully unrolled 3x3
        dy = ky - 1
        for kx in range(3):
            dx = kx - 1
            s = (W + 1) + dy * W + dx                   # static slice start
            wa = wsp_ref[ky * 3 + kx]                   # weight on avg map
            wm = wsp_ref[9 + ky * 3 + kx]               # weight on max map
            tap = wa * pa[:, s:s + HW] + wm * pm[:, s:s + HW]
            if dx == -1:                                # kill row-wrap taps
                tap = tap * mask_l
            elif dx == 1:
                tap = tap * mask_r
            acc = acc + tap

    att_s = jax.nn.sigmoid(acc + bsp_ref[0])            # (1, HW)

    # ---- final scale: single broadcast multiply over sublanes (C) ---------
    out_ref[0] = xca * att_s                             # (C, HW)


# -------------------------------- Wrapper ------------------------------------
@jax.jit
def cbam_forward(x, params):
    B, C, H, W = x.shape
    Cr = params["w1"].shape[0]
    HW = H * W

    x_flat = x.reshape(B, C, HW)                 # contiguous -> free reshape
    w1 = params["w1"]                            # (Cr, C)
    b1 = params["b1"].reshape(Cr, 1)             # (Cr, 1)
    w2 = params["w2"]                            # (C, Cr)
    b2 = params["b2"].reshape(C, 1)              # (C, 1)
    wsp = params["wsp"].reshape(-1)              # (18,)  [avg 3x3, max 3x3]
    bsp = params["bsp"].reshape(1)               # (1,)

    # column-boundary masks for the flattened 3x3 conv (tiny, shape (2, HW))
    col = jnp.arange(HW, dtype=jnp.int32) % W
    masks = jnp.stack([col != 0, col != W - 1], axis=0).astype(jnp.float32)

    kernel = functools.partial(cbam_kernel, H=H, W=W)

    out_flat = pl.pallas_call(
        kernel,
        out_shape=jax.ShapeDtypeStruct((B, C, HW), jnp.float32),
        grid=(B,),
        in_specs=[
            pl.BlockSpec((1, C, HW), lambda b: (b, 0, 0)),
            pl.BlockSpec((Cr, C), lambda b: (0, 0)),
            pl.BlockSpec((Cr, 1), lambda b: (0, 0)),
            pl.BlockSpec((C, Cr), lambda b: (0, 0)),
            pl.BlockSpec((C, 1), lambda b: (0, 0)),
            pl.BlockSpec((2, HW), lambda b: (0, 0)),
            pl.BlockSpec(memory_space=pltpu.MemorySpace.SMEM),
            pl.BlockSpec(memory_space=pltpu.MemorySpace.SMEM),
        ],
        out_specs=pl.BlockSpec((1, C, HW), lambda b: (b, 0, 0)),
        compiler_params=pltpu.CompilerParams(
            dimension_semantics=("parallel",),
            vmem_limit_bytes=32 * 1024 * 1024),
    )(x_flat, w1, b1, w2, b2, masks, wsp, bsp)

    return out_flat.reshape(B, C, H, W)          # free reshape back to NCHW


# --------------------------- Pure-JAX reference ------------------------------
def cbam_reference(x, params):
    w1, b1 = params["w1"], params["b1"]
    w2, b2 = params["w2"], params["b2"]
    wsp, bsp = params["wsp"], params["bsp"]
    hp = jax.lax.Precision.HIGHEST

    avg = jnp.mean(x, axis=(2, 3))            # (B, C)
    mx = jnp.max(x, axis=(2, 3))              # (B, C)

    def mlp(v):
        h = jnp.maximum(jnp.dot(v, w1.T, precision=hp) + b1, 0.0)
        return jnp.dot(h, w2.T, precision=hp) + b2

    att_c = jax.nn.sigmoid(mlp(avg) + mlp(mx))
    xc = x * att_c[:, :, None, None]

    avg_s = jnp.mean(xc, axis=1, keepdims=True)
    max_s = jnp.max(xc, axis=1, keepdims=True)
    cat = jnp.concatenate([avg_s, max_s], axis=1)           # (B, 2, H, W)
    conv = jax.lax.conv_general_dilated(
        cat, wsp, window_strides=(1, 1), padding="SAME",
        dimension_numbers=("NCHW", "OIHW", "NCHW"), precision=hp)
    att_s = jax.nn.sigmoid(conv + bsp.reshape(1, 1, 1, 1))  # (B, 1, H, W)
    return xc * att_s


# --------------------------------- Main --------------------------------------
if __name__ == "__main__":
    B, C, H, W = 2, 64, 16, 16
    reduction = 16
    Cr = C // reduction

    key = jax.random.PRNGKey(0)
    kx, k1, k2, k3, k4, k5, k6 = jax.random.split(key, 7)

    x = jax.random.normal(kx, (B, C, H, W), dtype=jnp.float32)

    params = {
        # fc1: Conv2d(C, C//r, 1)  -> weight (Cr, C), bias (Cr,)
        "w1": 0.5 * jax.random.normal(k1, (Cr, C), dtype=jnp.float32),
        "b1": 0.1 * jax.random.normal(k2, (Cr,), dtype=jnp.float32),
        # fc2: Conv2d(C//r, C, 1)  -> weight (C, Cr), bias (C,)
        "w2": 0.5 * jax.random.normal(k3, (C, Cr), dtype=jnp.float32),
        "b2": 0.1 * jax.random.normal(k4, (C,), dtype=jnp.float32),
        # conv_after_concat: Conv2d(2, 1, 3, padding=1) -> weight (1, 2, 3, 3)
        "wsp": 0.5 * jax.random.normal(k5, (1, 2, 3, 3), dtype=jnp.float32),
        "bsp": 0.1 * jax.random.normal(k6, (1,), dtype=jnp.float32),
    }

    out = cbam_forward(x, params)
    out = jax.block_until_ready(out)

    ref = cbam_reference(x, params)
    ref = jax.block_until_ready(ref)

    if not np.allclose(np.asarray(out), np.asarray(ref), atol=1e-4, rtol=1e-4):
        raise AssertionError(
            "Pallas CBAM output mismatch vs reference; max abs err = "
            f"{np.max(np.abs(np.asarray(out) - np.asarray(ref)))}")

    print("KERNEL_OK")
</pallas_src>

<mosaic_0001>
module attributes {stable_mosaic.version = 11 : i64} {
  func.func @cbam_kernel(%arg0: i32, %arg1: memref<1x64x256xf32, #tpu.memory_space<vmem>>, %arg2: memref<4x64xf32, #tpu.memory_space<vmem>>, %arg3: memref<4x1xf32, #tpu.memory_space<vmem>>, %arg4: memref<64x4xf32, #tpu.memory_space<vmem>>, %arg5: memref<64x1xf32, #tpu.memory_space<vmem>>, %arg6: memref<2x256xf32, #tpu.memory_space<vmem>>, %arg7: memref<18xf32, #tpu.memory_space<smem>>, %arg8: memref<1xf32, #tpu.memory_space<smem>>, %arg9: memref<1x64x256xf32, #tpu.memory_space<vmem>>) attributes {dimension_semantics = [#tpu.dimension_semantics<parallel>], iteration_bounds = array<i64: 2>, scalar_prefetch = 0 : i64, scratch_operands = 0 : i64, tpu.core_type = #tpu.core_type<tc>, window_params = [{transform_indices = @transform_0, window_bounds = array<i64: 1, 64, 256>}, {pipeline_mode = #tpu.pipeline_mode<synchronous>, transform_indices = @transform_1, window_bounds = array<i64: 4, 64>}, {pipeline_mode = #tpu.pipeline_mode<synchronous>, transform_indices = @transform_2, window_bounds = array<i64: 4, 1>}, {pipeline_mode = #tpu.pipeline_mode<synchronous>, transform_indices = @transform_3, window_bounds = array<i64: 64, 4>}, {pipeline_mode = #tpu.pipeline_mode<synchronous>, transform_indices = @transform_4, window_bounds = array<i64: 64, 1>}, {pipeline_mode = #tpu.pipeline_mode<synchronous>, transform_indices = @transform_5, window_bounds = array<i64: 2, 256>}, {transform_indices = @transform_6, window_bounds = array<i64: 18>}, {transform_indices = @transform_7, window_bounds = array<i64: 1>}, {transform_indices = @transform_8, window_bounds = array<i64: 1, 64, 256>}]} {
    %c0 = arith.constant 0 : index
    %c0_0 = arith.constant 0 : index
    %c0_1 = arith.constant 0 : index
    %0 = vector.load %arg1[%c0, %c0_0, %c0_1] : memref<1x64x256xf32, #tpu.memory_space<vmem>>, vector<1x64x256xf32>
    %1 = vector.shape_cast %0 : vector<1x64x256xf32> to vector<64x256xf32>
    %cst = arith.constant dense<0.000000e+00> : vector<64xf32>
    %2 = vector.multi_reduction <add>, %1, %cst [1] : vector<64x256xf32> to vector<64xf32>
    %3 = vector.shape_cast %2 : vector<64xf32> to vector<64x1xf32>
    %cst_2 = arith.constant 2.560000e+02 : f32
    %4 = vector.broadcast %cst_2 : f32 to vector<64x1xf32>
    %5 = arith.divf %3, %4 : vector<64x1xf32>
    %cst_3 = arith.constant dense<0xFF800000> : vector<64xf32>
    %6 = vector.multi_reduction <maximumf>, %1, %cst_3 [1] : vector<64x256xf32> to vector<64xf32>
    %7 = vector.shape_cast %6 : vector<64xf32> to vector<64x1xf32>
    %c0_4 = arith.constant 0 : index
    %c0_5 = arith.constant 0 : index
    %8 = vector.load %arg2[%c0_4, %c0_5] : memref<4x64xf32, #tpu.memory_space<vmem>>, vector<4x64xf32>
    %cst_6 = arith.constant dense<0.000000e+00> : vector<4x1xf32>
    %9 = tpu.matmul %8, %5, %cst_6 {dimension_numbers = #tpu.dot_dimension_numbers<[1], [0], [0], [1], [0, 0, 1, 1], [], []>, precision = #tpu.contract_precision<fp32>} : vector<4x64xf32>, vector<64x1xf32>, vector<4x1xf32> -> vector<4x1xf32>
    %c0_7 = arith.constant 0 : index
    %c0_8 = arith.constant 0 : index
    %10 = vector.load %arg3[%c0_7, %c0_8] : memref<4x1xf32, #tpu.memory_space<vmem>>, vector<4x1xf32>
    %11 = arith.addf %9, %10 : vector<4x1xf32>
    %cst_9 = arith.constant 0.000000e+00 : f32
    %12 = vector.broadcast %cst_9 : f32 to vector<4x1xf32>
    %13 = arith.maximumf %11, %12 : vector<4x1xf32>
    %c0_10 = arith.constant 0 : index
    %c0_11 = arith.constant 0 : index
    %14 = vector.load %arg4[%c0_10, %c0_11] : memref<64x4xf32, #tpu.memory_space<vmem>>, vector<64x4xf32>
    %cst_12 = arith.constant dense<0.000000e+00> : vector<64x1xf32>
    %15 = tpu.matmul %14, %13, %cst_12 {dimension_numbers = #tpu.dot_dimension_numbers<[1], [0], [0], [1], [0, 0, 1, 1], [], []>, precision = #tpu.contract_precision<fp32>} : vector<64x4xf32>, vector<4x1xf32>, vector<64x1xf32> -> vector<64x1xf32>
    %c0_13 = arith.constant 0 : index
    %c0_14 = arith.constant 0 : index
    %16 = vector.load %arg5[%c0_13, %c0_14] : memref<64x1xf32, #tpu.memory_space<vmem>>, vector<64x1xf32>
    %17 = arith.addf %15, %16 : vector<64x1xf32>
    %c0_15 = arith.constant 0 : index
    %c0_16 = arith.constant 0 : index
    %18 = vector.load %arg2[%c0_15, %c0_16] : memref<4x64xf32, #tpu.memory_space<vmem>>, vector<4x64xf32>
    %cst_17 = arith.constant dense<0.000000e+00> : vector<4x1xf32>
    %19 = tpu.matmul %18, %7, %cst_17 {dimension_numbers = #tpu.dot_dimension_numbers<[1], [0], [0], [1], [0, 0, 1, 1], [], []>, precision = #tpu.contract_precision<fp32>} : vector<4x64xf32>, vector<64x1xf32>, vector<4x1xf32> -> vector<4x1xf32>
    %c0_18 = arith.constant 0 : index
    %c0_19 = arith.constant 0 : index
    %20 = vector.load %arg3[%c0_18, %c0_19] : memref<4x1xf32, #tpu.memory_space<vmem>>, vector<4x1xf32>
    %21 = arith.addf %19, %20 : vector<4x1xf32>
    %cst_20 = arith.constant 0.000000e+00 : f32
    %22 = vector.broadcast %cst_20 : f32 to vector<4x1xf32>
    %23 = arith.maximumf %21, %22 : vector<4x1xf32>
    %c0_21 = arith.constant 0 : index
    %c0_22 = arith.constant 0 : index
    %24 = vector.load %arg4[%c0_21, %c0_22] : memref<64x4xf32, #tpu.memory_space<vmem>>, vector<64x4xf32>
    %cst_23 = arith.constant dense<0.000000e+00> : vector<64x1xf32>
    %25 = tpu.matmul %24, %23, %cst_23 {dimension_numbers = #tpu.dot_dimension_numbers<[1], [0], [0], [1], [0, 0, 1, 1], [], []>, precision = #tpu.contract_precision<fp32>} : vector<64x4xf32>, vector<4x1xf32>, vector<64x1xf32> -> vector<64x1xf32>
    %c0_24 = arith.constant 0 : index
    %c0_25 = arith.constant 0 : index
    %26 = vector.load %arg5[%c0_24, %c0_25] : memref<64x1xf32, #tpu.memory_space<vmem>>, vector<64x1xf32>
    %27 = arith.addf %25, %26 : vector<64x1xf32>
    %28 = arith.addf %17, %27 : vector<64x1xf32>
    %29 = arith.negf %28 : vector<64x1xf32>
    %30 = math.exp %29 : vector<64x1xf32>
    %cst_26 = arith.constant 1.000000e+00 : f32
    %31 = vector.broadcast %cst_26 : f32 to vector<64x1xf32>
    %32 = arith.addf %31, %30 : vector<64x1xf32>
    %33 = arith.divf %31, %32 : vector<64x1xf32>
    %34 = vector.broadcast %33 : vector<64x1xf32> to vector<64x256xf32>
    %35 = arith.mulf %1, %34 : vector<64x256xf32>
    %cst_27 = arith.constant dense<0.000000e+00> : vector<256xf32>
    %36 = vector.multi_reduction <add>, %35, %cst_27 [0] : vector<64x256xf32> to vector<256xf32>
    %37 = vector.shape_cast %36 : vector<256xf32> to vector<1x256xf32>
    %cst_28 = arith.constant 6.400000e+01 : f32
    %38 = vector.broadcast %cst_28 : f32 to vector<1x256xf32>
    %39 = arith.divf %37, %38 : vector<1x256xf32>
    %cst_29 = arith.constant dense<0xFF800000> : vector<256xf32>
    %40 = vector.multi_reduction <maximumf>, %35, %cst_29 [0] : vector<64x256xf32> to vector<256xf32>
    %41 = vector.shape_cast %40 : vector<256xf32> to vector<1x256xf32>
    %cst_30 = arith.constant 0.000000e+00 : f32
    %42 = vector.broadcast %cst_30 : f32 to vector<1x17xf32>
    %43 = tpu.concatenate %42, %39, %42 in 1 : vector<1x17xf32>, vector<1x256xf32>, vector<1x17xf32> -> vector<1x290xf32>
    %44 = tpu.concatenate %42, %41, %42 in 1 : vector<1x17xf32>, vector<1x256xf32>, vector<1x17xf32> -> vector<1x290xf32>
    %c0_31 = arith.constant 0 : index
    %c0_32 = arith.constant 0 : index
    %45 = vector.load %arg6[%c0_31, %c0_32] : memref<2x256xf32, #tpu.memory_space<vmem>>, vector<1x256xf32>
    %c1 = arith.constant 1 : index
    %c0_33 = arith.constant 0 : index
    %46 = vector.load %arg6[%c1, %c0_33] : memref<2x256xf32, #tpu.memory_space<vmem>>, vector<1x256xf32>
    %cst_34 = arith.constant 0.000000e+00 : f32
    %47 = vector.broadcast %cst_34 : f32 to vector<1x256xf32>
    %c0_35 = arith.constant 0 : index
    %48 = memref.load %arg7[%c0_35] : memref<18xf32, #tpu.memory_space<smem>>
    %c9 = arith.constant 9 : index
    %49 = memref.load %arg7[%c9] : memref<18xf32, #tpu.memory_space<smem>>
    %50 = vector.extract_strided_slice %43 {offsets = [0, 0], sizes = [1, 256], strides = [1, 1]} : vector<1x290xf32> to vector<1x256xf32>
    %51 = vector.broadcast %48 : f32 to vector<1x256xf32>
    %52 = arith.mulf %51, %50 : vector<1x256xf32>
    %53 = vector.extract_strided_slice %44 {offsets = [0, 0], sizes = [1, 256], strides = [1, 1]} : vector<1x290xf32> to vector<1x256xf32>
    %54 = vector.broadcast %49 : f32 to vector<1x256xf32>
    %55 = arith.mulf %54, %53 : vector<1x256xf32>
    %56 = arith.addf %52, %55 : vector<1x256xf32>
    %57 = arith.mulf %56, %45 : vector<1x256xf32>
    %58 = arith.addf %47, %57 : vector<1x256xf32>
    %c1_36 = arith.constant 1 : index
    %59 = memref.load %arg7[%c1_36] : memref<18xf32, #tpu.memory_space<smem>>
    %c10 = arith.constant 10 : index
    %60 = memref.load %arg7[%c10] : memref<18xf32, #tpu.memory_space<smem>>
    %61 = vector.extract_strided_slice %43 {offsets = [0, 1], sizes = [1, 256], strides = [1, 1]} : vector<1x290xf32> to vector<1x256xf32>
    %62 = vector.broadcast %59 : f32 to vector<1x256xf32>
    %63 = arith.mulf %62, %61 : vector<1x256xf32>
    %64 = vector.extract_strided_slice %44 {offsets = [0, 1], sizes = [1, 256], strides = [1, 1]} : vector<1x290xf32> to vector<1x256xf32>
    %65 = vector.broadcast %60 : f32 to vector<1x256xf32>
    %66 = arith.mulf %65, %64 : vector<1x256xf32>
    %67 = arith.addf %63, %66 : vector<1x256xf32>
    %68 = arith.addf %58, %67 : vector<1x256xf32>
    %c2 = arith.constant 2 : index
    %69 = memref.load %arg7[%c2] : memref<18xf32, #tpu.memory_space<smem>>
    %c11 = arith.constant 11 : index
    %70 = memref.load %arg7[%c11] : memref<18xf32, #tpu.memory_space<smem>>
    %71 = vector.extract_strided_slice %43 {offsets = [0, 2], sizes = [1, 256], strides = [1, 1]} : vector<1x290xf32> to vector<1x256xf32>
    %72 = vector.broadcast %69 : f32 to vector<1x256xf32>
    %73 = arith.mulf %72, %71 : vector<1x256xf32>
    %74 = vector.extract_strided_slice %44 {offsets = [0, 2], sizes = [1, 256], strides = [1, 1]} : vector<1x290xf32> to vector<1x256xf32>
    %75 = vector.broadcast %70 : f32 to vector<1x256xf32>
    %76 = arith.mulf %75, %74 : vector<1x256xf32>
    %77 = arith.addf %73, %76 : vector<1x256xf32>
    %78 = arith.mulf %77, %46 : vector<1x256xf32>
    %79 = arith.addf %68, %78 : vector<1x256xf32>
    %c3 = arith.constant 3 : index
    %80 = memref.load %arg7[%c3] : memref<18xf32, #tpu.memory_space<smem>>
    %c12 = arith.constant 12 : index
    %81 = memref.load %arg7[%c12] : memref<18xf32, #tpu.memory_space<smem>>
    %82 = vector.extract_strided_slice %43 {offsets = [0, 16], sizes = [1, 256], strides = [1, 1]} : vector<1x290xf32> to vector<1x256xf32>
    %83 = vector.broadcast %80 : f32 to vector<1x256xf32>
    %84 = arith.mulf %83, %82 : vector<1x256xf32>
    %85 = vector.extract_strided_slice %44 {offsets = [0, 16], sizes = [1, 256], strides = [1, 1]} : vector<1x290xf32> to vector<1x256xf32>
    %86 = vector.broadcast %81 : f32 to vector<1x256xf32>
    %87 = arith.mulf %86, %85 : vector<1x256xf32>
    %88 = arith.addf %84, %87 : vector<1x256xf32>
    %89 = arith.mulf %88, %45 : vector<1x256xf32>
    %90 = arith.addf %79, %89 : vector<1x256xf32>
    %c4 = arith.constant 4 : index
    %91 = memref.load %arg7[%c4] : memref<18xf32, #tpu.memory_space<smem>>
    %c13 = arith.constant 13 : index
    %92 = memref.load %arg7[%c13] : memref<18xf32, #tpu.memory_space<smem>>
    %93 = vector.extract_strided_slice %43 {offsets = [0, 17], sizes = [1, 256], strides = [1, 1]} : vector<1x290xf32> to vector<1x256xf32>
    %94 = vector.broadcast %91 : f32 to vector<1x256xf32>
    %95 = arith.mulf %94, %93 : vector<1x256xf32>
    %96 = vector.extract_strided_slice %44 {offsets = [0, 17], sizes = [1, 256], strides = [1, 1]} : vector<1x290xf32> to vector<1x256xf32>
    %97 = vector.broadcast %92 : f32 to vector<1x256xf32>
    %98 = arith.mulf %97, %96 : vector<1x256xf32>
    %99 = arith.addf %95, %98 : vector<1x256xf32>
    %100 = arith.addf %90, %99 : vector<1x256xf32>
    %c5 = arith.constant 5 : index
    %101 = memref.load %arg7[%c5] : memref<18xf32, #tpu.memory_space<smem>>
    %c14 = arith.constant 14 : index
    %102 = memref.load %arg7[%c14] : memref<18xf32, #tpu.memory_space<smem>>
    %103 = vector.extract_strided_slice %43 {offsets = [0, 18], sizes = [1, 256], strides = [1, 1]} : vector<1x290xf32> to vector<1x256xf32>
    %104 = vector.broadcast %101 : f32 to vector<1x256xf32>
    %105 = arith.mulf %104, %103 : vector<1x256xf32>
    %106 = vector.extract_strided_slice %44 {offsets = [0, 18], sizes = [1, 256], strides = [1, 1]} : vector<1x290xf32> to vector<1x256xf32>
    %107 = vector.broadcast %102 : f32 to vector<1x256xf32>
    %108 = arith.mulf %107, %106 : vector<1x256xf32>
    %109 = arith.addf %105, %108 : vector<1x256xf32>
    %110 = arith.mulf %109, %46 : vector<1x256xf32>
    %111 = arith.addf %100, %110 : vector<1x256xf32>
    %c6 = arith.constant 6 : index
    %112 = memref.load %arg7[%c6] : memref<18xf32, #tpu.memory_space<smem>>
    %c15 = arith.constant 15 : index
    %113 = memref.load %arg7[%c15] : memref<18xf32, #tpu.memory_space<smem>>
    %114 = vector.extract_strided_slice %43 {offsets = [0, 32], sizes = [1, 256], strides = [1, 1]} : vector<1x290xf32> to vector<1x256xf32>
    %115 = vector.broadcast %112 : f32 to vector<1x256xf32>
    %116 = arith.mulf %115, %114 : vector<1x256xf32>
    %117 = vector.extract_strided_slice %44 {offsets = [0, 32], sizes = [1, 256], strides = [1, 1]} : vector<1x290xf32> to vector<1x256xf32>
    %118 = vector.broadcast %113 : f32 to vector<1x256xf32>
    %119 = arith.mulf %118, %117 : vector<1x256xf32>
    %120 = arith.addf %116, %119 : vector<1x256xf32>
    %121 = arith.mulf %120, %45 : vector<1x256xf32>
    %122 = arith.addf %111, %121 : vector<1x256xf32>
    %c7 = arith.constant 7 : index
    %123 = memref.load %arg7[%c7] : memref<18xf32, #tpu.memory_space<smem>>
    %c16 = arith.constant 16 : index
    %124 = memref.load %arg7[%c16] : memref<18xf32, #tpu.memory_space<smem>>
    %125 = vector.extract_strided_slice %43 {offsets = [0, 33], sizes = [1, 256], strides = [1, 1]} : vector<1x290xf32> to vector<1x256xf32>
    %126 = vector.broadcast %123 : f32 to vector<1x256xf32>
    %127 = arith.mulf %126, %125 : vector<1x256xf32>
    %128 = vector.extract_strided_slice %44 {offsets = [0, 33], sizes = [1, 256], strides = [1, 1]} : vector<1x290xf32> to vector<1x256xf32>
    %129 = vector.broadcast %124 : f32 to vector<1x256xf32>
    %130 = arith.mulf %129, %128 : vector<1x256xf32>
    %131 = arith.addf %127, %130 : vector<1x256xf32>
    %132 = arith.addf %122, %131 : vector<1x256xf32>
    %c8 = arith.constant 8 : index
    %133 = memref.load %arg7[%c8] : memref<18xf32, #tpu.memory_space<smem>>
    %c17 = arith.constant 17 : index
    %134 = memref.load %arg7[%c17] : memref<18xf32, #tpu.memory_space<smem>>
    %135 = vector.extract_strided_slice %43 {offsets = [0, 34], sizes = [1, 256], strides = [1, 1]} : vector<1x290xf32> to vector<1x256xf32>
    %136 = vector.broadcast %133 : f32 to vector<1x256xf32>
    %137 = arith.mulf %136, %135 : vector<1x256xf32>
    %138 = vector.extract_strided_slice %44 {offsets = [0, 34], sizes = [1, 256], strides = [1, 1]} : vector<1x290xf32> to vector<1x256xf32>
    %139 = vector.broadcast %134 : f32 to vector<1x256xf32>
    %140 = arith.mulf %139, %138 : vector<1x256xf32>
    %141 = arith.addf %137, %140 : vector<1x256xf32>
    %142 = arith.mulf %141, %46 : vector<1x256xf32>
    %143 = arith.addf %132, %142 : vector<1x256xf32>
    %c0_37 = arith.constant 0 : index
    %144 = memref.load %arg8[%c0_37] : memref<1xf32, #tpu.memory_space<smem>>
    %145 = vector.broadcast %144 : f32 to vector<1x256xf32>
    %146 = arith.addf %143, %145 : vector<1x256xf32>
    %147 = arith.negf %146 : vector<1x256xf32>
    %148 = math.exp %147 : vector<1x256xf32>
    %cst_38 = arith.constant 1.000000e+00 : f32
    %149 = vector.broadcast %cst_38 : f32 to vector<1x256xf32>
    %150 = arith.addf %149, %148 : vector<1x256xf32>
    %151 = arith.divf %149, %150 : vector<1x256xf32>
    %152 = vector.broadcast %151 : vector<1x256xf32> to vector<64x256xf32>
    %153 = arith.mulf %35, %152 : vector<64x256xf32>
    %c0_39 = arith.constant 0 : index
    %c0_40 = arith.constant 0 : index
    %c0_41 = arith.constant 0 : index
    %154 = vector.load %arg9[%c0_39, %c0_40, %c0_41] : memref<1x64x256xf32, #tpu.memory_space<vmem>>, vector<1x64x256xf32>
    %155 = vector.shape_cast %154 : vector<1x64x256xf32> to vector<64x256xf32>
    %156 = vector.shape_cast %153 : vector<64x256xf32> to vector<1x64x256xf32>
    tpu.vector_store %arg9[%c0_39, %c0_40, %c0_41], %156 {strides = array<i32>} : memref<1x64x256xf32, #tpu.memory_space<vmem>>, vector<1x64x256xf32>,
    return
  }
  func.func @transform_0(%arg0: i32) -> (i32, i32, i32) {
    %c0_i32 = arith.constant 0 : i32
    %c0_i32_0 = arith.constant 0 : i32
    %c0_i32_1 = arith.constant 0 : i32
    return %arg0, %c0_i32, %c0_i32_0 : i32, i32, i32
  }
  func.func @transform_1(%arg0: i32) -> (i32, i32) {
    %c0_i32 = arith.constant 0 : i32
    %c0_i32_0 = arith.constant 0 : i32
    %c0_i32_1 = arith.constant 0 : i32
    return %c0_i32, %c0_i32_0 : i32, i32
  }
  func.func @transform_2(%arg0: i32) -> (i32, i32) {
    %c0_i32 = arith.constant 0 : i32
    %c0_i32_0 = arith.constant 0 : i32
    %c0_i32_1 = arith.constant 0 : i32
    return %c0_i32, %c0_i32_0 : i32, i32
  }
  func.func @transform_3(%arg0: i32) -> (i32, i32) {
    %c0_i32 = arith.constant 0 : i32
    %c0_i32_0 = arith.constant 0 : i32
    %c0_i32_1 = arith.constant 0 : i32
    return %c0_i32, %c0_i32_0 : i32, i32
  }
  func.func @transform_4(%arg0: i32) -> (i32, i32) {
    %c0_i32 = arith.constant 0 : i32
    %c0_i32_0 = arith.constant 0 : i32
    %c0_i32_1 = arith.constant 0 : i32
    return %c0_i32, %c0_i32_0 : i32, i32
  }
  func.func @transform_5(%arg0: i32) -> (i32, i32) {
    %c0_i32 = arith.constant 0 : i32
    %c0_i32_0 = arith.constant 0 : i32
    %c0_i32_1 = arith.constant 0 : i32
    return %c0_i32, %c0_i32_0 : i32, i32
  }
  func.func @transform_6(%arg0: i32) -> i32 {
    %c0_i32 = arith.constant 0 : i32
    %c0_i32_0 = arith.constant 0 : i32
    return %c0_i32 : i32
  }
  func.func @transform_7(%arg0: i32) -> i32 {
    %c0_i32 = arith.constant 0 : i32
    %c0_i32_0 = arith.constant 0 : i32
    return %c0_i32 : i32
  }
  func.func @transform_8(%arg0: i32) -> (i32, i32, i32) {
    %c0_i32 = arith.constant 0 : i32
    %c0_i32_0 = arith.constant 0 : i32
    %c0_i32_1 = arith.constant 0 : i32
    return %arg0, %c0_i32, %c0_i32_0 : i32, i32, i32
  }
}

</mosaic_0001>

<bundles_post_ra>
// kernel: cbam_forward.1
= control target key start
LH: loop header
LB: loop body
LE: loop exit
PB: predicated region body
PF: predicated region fallthrough
CT: control target
= control target key end

     0   :  { %s5520_s0 = inlined_call_operand.vmem [shape: f32[2,64,256], index: 0, kind: input, shape index: {}]   ;;  %s5521_s1 = inlined_call_operand.vmem [shape: f32[4,64], index: 1, kind: input, shape index: {}]   ;;  %s5522_s2 = inlined_call_operand.vmem [shape: f32[4,1], index: 2, kind: input, shape index: {}]   ;;  %s5523_s3 = inlined_call_operand.vmem [shape: f32[64,4], index: 3, kind: input, shape index: {}]   ;;  %s5524_s4 = inlined_call_operand.vmem [shape: f32[64,1], index: 4, kind: input, shape index: {}]   ;;  %s5525_s5 = inlined_call_operand.vmem [shape: f32[2,256], index: 5, kind: input, shape index: {}]   ;;  %s5526_s6 = inlined_call_operand.vmem [shape: f32[18], index: 6, kind: input, shape index: {}]   ;;  %s5527_s7 = inlined_call_operand.<no memory space> [shape: f32[1], index: 7, kind: input, shape index: {}]   ;;  %s5528_s8 = inlined_call_operand.vmem [shape: f32[2,64,256], index: 8, kind: output, shape index: {}]  }
   0x1   :  { %13 = sst [smem:[#allocation2]] %s5527_s7 }
   0x2   :  { %14 = vsyncpa [#allocation4], 0  ;;  %s4504_s29 = smov 0  }
   0x3 LB: > { %s3662_s30 = sadd.s32 4294967295, %s4436_s29   ;;  %p3664_p0 = scmp.ge.s32.totalorder %s4436_s29, 1  ;;  %s4436_s29 = sphi %s4504_s29, %s20_s29  }
   0x4   : > { %p224_p1 = scmp.lt.s32.totalorder %s4436_s29, 3  ;;  %s252_s11 = sshll.u32 %s5526_s6, 4  ;;  %s253_s11 = int_to_ptr.vmem [resolvable:$true] %s252_s11 }
   0x5   : > { %p4325_p3 = scmp.eq.s32.totalorder %s3662_s30, 0  ;;  %s4411_s12 = scalar_lea.vmem %s253_s11, 16 }
   0x6   : > { %p4515_p2 = pnand %p3664_p0, %p224_p1  ;;  %p4412_p6 = scmp.ne.s32.totalorder %s253_s11, %s4411_s12 }
   0x7   : > { %p4419_p10 = scmp.lt.s32.totalorder %s253_s11, %s253_s11  ;;  %p4420_p11 = scmp.lt.s32.totalorder %s4411_s12, %s4411_s12 }
   0x8   : > { %p4321_p4 = pneg %p4515_p2 }
   0x9   : > { %p4421_p12 = por %p4420_p11, %p4419_p10 }
   0xa   : > { %p4322_p5 = pnand %p4325_p3, %p4321_p4 }
   0xc   : > { %p4413_p7 = pneg %p4322_p5 }
   0xe   : > { %p4414_p8 = pnand %p4413_p7, %p4412_p6 }
  0x10   : > { %p4415_p9 = pneg %p4414_p8 }
  0x12   : > { %p4422_p13 = pnand %p4421_p12, %p4415_p9 }
  0x14   : > { %4425 = shalt.err (!%p4422_p13)
}
  0x15   : > { %s4438_s13 = smov [#allocation3]   ;;  %276 = sbr.rel (%p4515_p2) target bundleno = 1509 (0x5e5), region = 52 }
  0x16   : > { %4324 = dma.vmem_to_smem (!%p4322_p5), %s253_s11, 16, %s4438_s13, [#allocation4]  }
  0x1a   : > { %4431 = dma.done.wait (%p4325_p3), [#allocation4], 16  }
  0x1b   : > { %4433 = vsyncadd (%p4325_p3), [#allocation4], 4294967280 }
  0x1c   : > { %282 = sfence }
  0x1d   : > { %p311_p0 = scmp.lt.s32.totalorder %s3662_s30, 1  ;;  %v4439_v24 = vmov 0.0   ;;  %vm4440_vm0 = vmmov 0   ;;  %v394_v33 = vld [vmem:[%s5521_s1] sm:$0xf]  ;;  %vm396_vm1 = vcmask 523264  }
  0x1e   : > { %3921 = vmatprep.subr.mxu0 %v4439_v24  ;;  %3940 = vmatprep.subr.mxu1 %v4439_v24  ;;  %v398_v34 = vsel %vm396_vm1, %v394_v33, 0  ;;  %v938_v33 = vld [vmem:[%s5523_s3] sm:$0xff]  ;;  %vm954_vm2 = vcmask 31744   ;;  %vm979_vm3 = vcmask 1043456   ;;  %s4442_s18 = smov 2   ;;  %s4444_s21 = smov 16  }
  0x1f   : > { %s5557_s30 = smov (!%p311_p0, %s3662_s30), 1  ;;  %3937 = vmatprep.mubr.msk.f32.mxu0 %vm4440_vm0, %v4439_v24  ;;  %3956 = vmatprep.mubr.msk.f32.mxu1 %vm4440_vm0, %v4439_v24  ;;  %v4561_v39 = vand.u32 4294901760, %v398_v34  ;;  %s4445_s22 = smov 18   ;;  %vm3191_vm4 = vcmask 138240   ;;  %vm3293_vm5 = vcmask 15360   ;;  %vm3334_vm6 = vcmask 130048  }
  0x20   : > { %s3703_s14 = sshll.u32 %s5557_s30, 7  ;;  %s4446_s23 = smov 32   ;;  %vm3404_vm7 = vcmask 146432   ;;  %vm3445_vm8 = vcmask 261120   ;;  %vm3515_vm9 = vcmask 277504   ;;  %vm3260_vm10 = vcmask 1039360  }
  0x21   : > { %s4534_s17 = scalar_lea.vmem %s5520_s0, %s3703_s14  ;;  %v4576_v48 = vsub.f32 %v398_v34, %v4561_v39  ;;  %v956_v34 = vsel %vm954_vm2, %v938_v33, 0  ;;  %s4447_s24 = smov 34   ;;  %vm3310_vm11 = vcmask 1031168   ;;  %vm3351_vm12 = vcmask 916480  }
  0x22   : > { %v335_v0 = vld [vmem:[%s4534_s17 + $0x70] sm:$0xff]  ;;  %v336_v1 = vld [vmem:[%s4534_s17 + $0x78] sm:$0xff]  ;;  %v333_v5 = vld [vmem:[%s4534_s17 + $0x60] sm:$0xff]  ;;  %s3684_s25 = sld [smem:[#allocation3 + $0xa]]  ;;  %s4448_s12 = smov 127   ;;  %vm3380_vm13 = vcmask 908288  }
  0x23   : > { %v331_v2 = vld [vmem:[%s4534_s17 + $0x50] sm:$0xff]  ;;  %v358_v3 = vadd.f32 %v336_v1, %v335_v0  ;;  %v332_v4 = vld [vmem:[%s4534_s17 + $0x58] sm:$0xff]  ;;  %v334_v6 = vld [vmem:[%s4534_s17 + $0x68] sm:$0xff]  ;;  %v391_v25 = vmax.f32 %v335_v0, %v336_v1  ;;  %v4596_v60 = vand.u32 4294901760, %v4576_v48  ;;  %s3683_s26 = sld [smem:[#allocation3 + $0x1]]  ;;  %vm3421_vm14 = vcmask 900096  }
  0x24   : > { %v352_v7 = vadd.f32 %v332_v4, %v331_v2  ;;  %v329_v8 = vld [vmem:[%s4534_s17 + $0x40] sm:$0xff]  ;;  %v330_v9 = vld [vmem:[%s4534_s17 + $0x48] sm:$0xff]  ;;  %v355_v10 = vadd.f32 %v334_v6, %v333_v5  ;;  %v327_v12 = vld [vmem:[%s4534_s17 + $0x30] sm:$0xff]  ;;  %v388_v26 = vmax.f32 %v333_v5, %v334_v6  ;;  %v385_v27 = vmax.f32 %v331_v2, %v332_v4  ;;  %s3689_s27 = sld [smem:[#allocation3 + $0x4]] }
  0x25   : > { %359 = vadd.xlane.f32.xlu0 %v358_v3  ;;  %v349_v11 = vadd.f32 %v330_v9, %v329_v8  ;;  %v328_v13 = vld [vmem:[%s4534_s17 + $0x38] sm:$0xff]  ;;  %v325_v14 = vld [vmem:[%s4534_s17 + $0x20] sm:$0xff]  ;;  %v326_v15 = vld [vmem:[%s4534_s17 + $0x28] sm:$0xff]  ;;  %v382_v28 = vmax.f32 %v329_v8, %v330_v9  ;;  %s3690_s28 = sld [smem:[#allocation3 + $0xd]]  ;;  %vm3462_vm15 = vcmask 785408   ;;  %vm3532_vm1 = vcmask 769024  }
  0x26   : > { %353 = vadd.xlane.f32.xlu1 %v352_v7  ;;  %v346_v16 = vadd.f32 %v328_v13, %v327_v12  ;;  %v343_v17 = vadd.f32 %v326_v15, %v325_v14  ;;  %v323_v18 = vld [vmem:[%s4534_s17 + $0x10] sm:$0xff]  ;;  %v324_v19 = vld [vmem:[%s4534_s17 + $0x18] sm:$0xff]  ;;  %v321_v20 = vld [vmem:[%s4534_s17] sm:$0xff]  ;;  %v379_v29 = vmax.f32 %v327_v12, %v328_v13  ;;  %v376_v30 = vmax.f32 %v325_v14, %v326_v15  ;;  %s5388_s9 = sld [smem:[#allocation3 + $0x10]] }
  0x27   : > { %v322_v21 = vld [vmem:[%s4534_s17 + $0x8] sm:$0xff]  ;;  %v340_v22 = vadd.f32 %v324_v19, %v323_v18  ;;  %v373_v31 = vmax.f32 %v323_v18, %v324_v19  ;;  %s3695_s10 = sld [smem:[#allocation3 + $0x7]] }
  0x28   : > { %v337_v23 = vadd.f32 %v322_v21, %v321_v20  ;;  %v370_v32 = vmax.f32 %v321_v20, %v322_v21  ;;  %s3685_s11 = sld [smem:[#allocation3 + $0x2]] }
  0x29   : > { %356 = vadd.xlane.f32.xlu0 %v355_v10  ;;  %v476_v10 = vsub.f32 %v4576_v48, %v4596_v60  ;;  %s3687_s7 = sld [smem:[#allocation3 + $0x3]] }
  0x2a   : > { %350 = vadd.xlane.f32.xlu1 %v349_v11  ;;  %s3686_s13 = sld [smem:[#allocation3 + $0xb]] }
  0x2b   : > { %s5400_s15 = sld [smem:[#allocation3 + $0x9]] }
  0x2c   : > { %s5403_s16 = sld [smem:[#allocation3]] }
  0x2d   : > { %347 = vadd.xlane.f32.xlu0 %v346_v16  ;;  %s5414_s19 = sld [smem:[#allocation3 + $0x5]] }
  0x2e   : > { %344 = vadd.xlane.f32.xlu1 %v343_v17  ;;  %s5421_s20 = sld [smem:[#allocation3 + $0xe]] }
  0x31   : > { %341 = vadd.xlane.f32.xlu0 %v340_v22  ;;  %v4647_v22 = vand.u32 4294901760, %v476_v10 }
  0x32   : > { %338 = vadd.xlane.f32.xlu1 %v337_v23 }
  0x35   : > { %392 = vmax.xlane.f32.xlu0 %v391_v25 }
  0x36   : > { %389 = vmax.xlane.f32.xlu1 %v388_v26 }
  0x39   : > { %386 = vmax.xlane.f32.xlu0 %v385_v27 }
  0x3a   : > { %383 = vmax.xlane.f32.xlu1 %v382_v28 }
  0x3d   : > { %380 = vmax.xlane.f32.xlu0 %v379_v29 }
  0x3e   : > { %377 = vmax.xlane.f32.xlu1 %v376_v30 }
  0x41   : > { %374 = vmax.xlane.f32.xlu0 %v373_v31 }
  0x42   : > { %371 = vmax.xlane.f32.xlu1 %v370_v32 }
  0xae   : > { %v360_v35 = vpop.xlane.xlu0 %359 }
  0xaf   : > { %v369_v36 = vmul.f32 0.00390625, %v360_v35  ;;  %v354_v37 = vpop.xlane.xlu1 %353  ;;  %v4757_v35 = vand.u32 4294901760, %v956_v34 }
  0xb0   : > { %v367_v38 = vmul.f32 0.00390625, %v354_v37 }
  0xb1   : > { %v4563_v40 = vand.u32 4294901760, %v369_v36 }
  0xb2   : > { %v4565_v41 = vand.u32 4294901760, %v367_v38  ;;  %v357_v42 = vpop.xlane.xlu0 %356 }
  0xb3   : > { %v4568_v43 = vsub.f32 %v369_v36, %v4563_v40  ;;  %v368_v44 = vmul.f32 0.00390625, %v357_v42  ;;  %v351_v45 = vpop.xlane.xlu1 %350  ;;  %3922 = vmatpush3.msra.mxu0 %v4563_v40  ;;  %v4760_v36 = vsub.f32 %v956_v34, %v4757_v35 }
  0xb4   : > { %v4572_v46 = vsub.f32 %v367_v38, %v4565_v41  ;;  %v366_v47 = vmul.f32 0.00390625, %v351_v45  ;;  %3923 = vmatprep.subr.mxu0 %v4439_v24 }
  0xb5   : > { %v4578_v49 = vand.u32 4294901760, %v368_v44  ;;  %v502_v50 = vand.u32 4294901760, %v4568_v43  ;;  %v4764_v37 = vand.u32 4294901760, %v4760_v36 }
  0xb6   : > { %v4581_v51 = vand.u32 4294901760, %v366_v47  ;;  %v348_v52 = vpop.xlane.xlu0 %347  ;;  %v516_v57 = vand.u32 4294901760, %v4572_v46 }
  0xb7   : > { %v4584_v53 = vsub.f32 %v368_v44, %v4578_v49  ;;  %v365_v54 = vmul.f32 0.00390625, %v348_v52  ;;  %v345_v55 = vpop.xlane.xlu1 %344  ;;  %3924 = vmatpush3.msra.mxu0 %v4578_v49  ;;  %v503_v56 = vsub.f32 %v4568_v43, %v502_v50  ;;  %v1052_v38 = vsub.f32 %v4760_v36, %v4764_v37  ;;  %v4780_v52 = vld [vmem:[%s5522_s2] sm:$0xf] }
  0xb8   : > { %v4592_v58 = vsub.f32 %v366_v47, %v4581_v51  ;;  %v364_v59 = vmul.f32 0.00390625, %v345_v55  ;;  %3925 = vmatprep.subr.mxu0 %v4439_v24  ;;  %v517_v7 = vsub.f32 %v4572_v46, %v516_v57  ;;  %v941_v55 = vld [vmem:[%s5523_s3 + $0x18] sm:$0xff] }
  0xb9   : > { %v4598_v61 = vand.u32 4294901760, %v365_v54  ;;  %3926 = vmatpush3.msra.mxu0 %v4565_v41  ;;  %v504_v62 = vand.u32 4294901760, %v503_v56  ;;  %v509_v63 = vand.u32 4294901760, %v4584_v53 }
  0xba   : > { %v4602_v0 = vand.u32 4294901760, %v364_v59  ;;  %3927 = vmatprep.subr.mxu0 %v4439_v24  ;;  %v342_v1 = vpop.xlane.xlu0 %341  ;;  %v523_v2 = vand.u32 4294901760, %v4592_v58  ;;  %v518_v18 = vand.u32 4294901760, %v517_v7 }
  0xbb   : > { %v4607_v3 = vsub.f32 %v365_v54, %v4598_v61  ;;  %v363_v4 = vmul.f32 0.00390625, %v342_v1  ;;  %v339_v5 = vpop.xlane.xlu1 %338  ;;  %3928 = vmatpush3.msra.mxu0 %v4581_v51  ;;  %3941 = vmatpush3.msra.mxu1 %v504_v62  ;;  %v510_v6 = vsub.f32 %v4584_v53, %v509_v63  ;;  %v965_v62 = vsel %vm954_vm2, %v941_v55, 0 }
  0xbc   : > { %v4617_v8 = vsub.f32 %v364_v59, %v4602_v0  ;;  %v362_v9 = vmul.f32 0.00390625, %v339_v5  ;;  %3929 = vmatprep.subr.mxu0 %v4439_v24  ;;  %3942 = vmatprep.subr.mxu1 %v4439_v24  ;;  %v524_v13 = vsub.f32 %v4592_v58, %v523_v2 }
  0xbd   : > { %v4623_v11 = vand.u32 4294901760, %v363_v4  ;;  %3930 = vmatpush3.msra.mxu0 %v4598_v61  ;;  %v511_v12 = vand.u32 4294901760, %v510_v6  ;;  %v530_v14 = vand.u32 4294901760, %v4607_v3  ;;  %v4809_v6 = vand.u32 4294901760, %v965_v62 }
  0xbe   : > { %v4630_v15 = vand.u32 4294901760, %v362_v9  ;;  %3931 = vmatprep.subr.mxu0 %v4439_v24  ;;  %v537_v16 = vand.u32 4294901760, %v4617_v8  ;;  %v525_v21 = vand.u32 4294901760, %v524_v13 }
  0xbf   : > { %v4635_v17 = vsub.f32 %v363_v4, %v4623_v11  ;;  %3932 = vmatpush3.msra.mxu0 %v4602_v0  ;;  %3943 = vmatpush3.msra.mxu1 %v511_v12  ;;  %v531_v19 = vsub.f32 %v4607_v3, %v530_v14  ;;  %v944_v4 = vld [vmem:[%s5523_s3 + $0x30] sm:$0xff] }
  0xc0   : > { %v4642_v20 = vsub.f32 %v362_v9, %v4630_v15  ;;  %3933 = vmatprep.subr.mxu0 %v4439_v24  ;;  %3944 = vmatprep.subr.mxu1 %v4439_v24  ;;  %v538_v23 = vsub.f32 %v4617_v8, %v537_v16  ;;  %v974_v10 = vsel %vm954_vm2, %v944_v4, 0  ;;  %v390_v4 = vpop.xlane.xlu1 %389 }
  0xc1   : > { %3934 = vmatpush3.msra.mxu0 %v4623_v11  ;;  %3945 = vmatpush3.msra.mxu1 %v518_v18  ;;  %v544_v25 = vand.u32 4294901760, %v4635_v17  ;;  %v532_v27 = vand.u32 4294901760, %v531_v19  ;;  %v4832_v19 = vand.u32 4294901760, %v974_v10 }
  0xc2   : > { %3935 = vmatprep.subr.mxu0 %v4439_v24  ;;  %3946 = vmatprep.subr.mxu1 %v4439_v24  ;;  %v551_v26 = vand.u32 4294901760, %v4642_v20  ;;  %v539_v29 = vand.u32 4294901760, %v538_v23 }
  0xc3   : > { %3936 = vmatpush3.msra.mxu0 %v4630_v15  ;;  %3947 = vmatpush3.msra.mxu1 %v525_v21  ;;  %v545_v28 = vsub.f32 %v4635_v17, %v544_v25  ;;  %v4851_v33 = vsub.f32 %v974_v10, %v4832_v19 }
  0xc4   : > { %3948 = vmatprep.subr.mxu1 %v4439_v24  ;;  %3959 = vmatprep.subr.mxu0 %v4439_v24  ;;  %v552_v30 = vsub.f32 %v4642_v20, %v551_v26 }
  0xc5   : > { %3938 = vmatmul.mubr.f32.vlgmr.msra.gmra.mxu0 %v4647_v22  ;;  %3949 = vmatpush3.msra.mxu1 %v532_v27  ;;  %v546_v31 = vand.u32 4294901760, %v545_v28 }
  0xc6   : > { %3960 = vmatpush3.msra.mxu0 %v4568_v43  ;;  %3950 = vmatprep.subr.mxu1 %v4439_v24  ;;  %v553_v32 = vand.u32 4294901760, %v552_v30 }
  0xc7   : > { %3961 = vmatprep.subr.mxu0 %v4439_v24  ;;  %3951 = vmatpush3.msra.mxu1 %v539_v29 }
  0xc8   : > { %3962 = vmatpush3.msra.mxu0 %v4584_v53  ;;  %3952 = vmatprep.subr.mxu1 %v4439_v24 }
  0xc9   : > { %3963 = vmatprep.subr.mxu0 %v4439_v24  ;;  %3953 = vmatpush3.msra.mxu1 %v546_v31 }
  0xca   : > { %3964 = vmatpush3.msra.mxu0 %v4572_v46  ;;  %3954 = vmatprep.subr.mxu1 %v4439_v24 }
  0xcb   : > { %3965 = vmatprep.subr.mxu0 %v4439_v24  ;;  %3955 = vmatpush3.msra.mxu1 %v553_v32 }
  0xcc   : > { %3966 = vmatpush3.msra.mxu0 %v4592_v58  ;;  %3957 = vmatmul.mubr.f32.vlgmr.msra.gmra.mxu1 %v4561_v39  ;;  %v942_v58 = vld [vmem:[%s5523_s3 + $0x20] sm:$0xff] }
  0xcd   : > { %3967 = vmatprep.subr.mxu0 %v4439_v24  ;;  %3978 = vmatprep.subr.mxu1 %v4439_v24 }
  0xce   : > { %3968 = vmatpush3.msra.mxu0 %v4607_v3  ;;  %3979 = vmatpush3.msra.mxu1 %v4563_v40 }
  0xcf   : > { %3969 = vmatprep.subr.mxu0 %v4439_v24  ;;  %3980 = vmatprep.subr.mxu1 %v4439_v24 }
  0xd0   : > { %3970 = vmatpush3.msra.mxu0 %v4617_v8  ;;  %3981 = vmatpush3.msra.mxu1 %v4578_v49 }
  0xd1   : > { %3971 = vmatprep.subr.mxu0 %v4439_v24  ;;  %3982 = vmatprep.subr.mxu1 %v4439_v24 }
  0xd2   : > { %3972 = vmatpush3.msra.mxu0 %v4635_v17  ;;  %3983 = vmatpush3.msra.mxu1 %v4565_v41 }
  0xd3   : > { %3973 = vmatprep.subr.mxu0 %v4439_v24  ;;  %3984 = vmatprep.subr.mxu1 %v4439_v24 }
  0xd4   : > { %3974 = vmatpush3.msra.mxu0 %v4642_v20  ;;  %3975 = vmatprep.mubr.msk.f32.mxu0 %vm4440_vm0, %v4439_v24 }
  0xd5   : > { %3985 = vmatpush3.msra.mxu1 %v4581_v51  ;;  %3976 = vmatmul.mubr.f32.vlgmr.msra.gmra.mxu0 %v4576_v48 }
  0xd6   : > { %3986 = vmatprep.subr.mxu1 %v4439_v24  ;;  %3997 = vmatprep.subr.mxu0 %v4439_v24 }
  0xd7   : > { %3987 = vmatpush3.msra.mxu1 %v4598_v61  ;;  %3998 = vmatpush3.msra.mxu0 %v502_v50 }
  0xd8   : > { %3988 = vmatprep.subr.mxu1 %v4439_v24  ;;  %3999 = vmatprep.subr.mxu0 %v4439_v24 }
  0xd9   : > { %3989 = vmatpush3.msra.mxu1 %v4602_v0  ;;  %4000 = vmatpush3.msra.mxu0 %v509_v63  ;;  %v968_v63 = vsel %vm954_vm2, %v942_v58, 0 }
  0xda   : > { %3990 = vmatprep.subr.mxu1 %v4439_v24  ;;  %4001 = vmatprep.subr.mxu0 %v4439_v24  ;;  %v4811_v8 = vand.u32 4294901760, %v968_v63 }
  0xdb   : > { %3991 = vmatpush3.msra.mxu1 %v4623_v11  ;;  %4002 = vmatpush3.msra.mxu0 %v516_v57 }
  0xdc   : > { %3992 = vmatprep.subr.mxu1 %v4439_v24  ;;  %4003 = vmatprep.subr.mxu0 %v4439_v24  ;;  %v4830_v18 = vsub.f32 %v968_v63, %v4811_v8 }
  0xdd   : > { %3993 = vmatpush3.msra.mxu1 %v4630_v15  ;;  %3994 = vmatprep.mubr.msk.f32.mxu1 %vm4440_vm0, %v4439_v24 }
  0xde   : > { %4004 = vmatpush3.msra.mxu0 %v523_v2  ;;  %3995 = vmatmul.mubr.f32.vlgmr.msra.gmra.mxu1 %v4596_v60  ;;  %v4848_v32 = vand.u32 4294901760, %v4830_v18 }
  0xdf   : > { %4005 = vmatprep.subr.mxu0 %v4439_v24  ;;  %4016 = vmatprep.subr.mxu1 %v4439_v24 }
  0xe0   : > { %4006 = vmatpush3.msra.mxu0 %v530_v14  ;;  %4017 = vmatpush3.msra.mxu1 %v4563_v40  ;;  %v4768_v40 = vand.u32 4294901760, %v1052_v38 }
  0xe1   : > { %4007 = vmatprep.subr.mxu0 %v4439_v24  ;;  %4018 = vmatprep.subr.mxu1 %v4439_v24 }
  0xe2   : > { %4008 = vmatpush3.msra.mxu0 %v537_v16  ;;  %4019 = vmatpush3.msra.mxu1 %v4578_v49  ;;  %v939_v49 = vld [vmem:[%s5523_s3 + $0x8] sm:$0xff] }
  0xe3   : > { %4009 = vmatprep.subr.mxu0 %v4439_v24  ;;  %4020 = vmatprep.subr.mxu1 %v4439_v24  ;;  %v959_v53 = vsel %vm954_vm2, %v939_v49, 0 }
  0xe4   : > { %4010 = vmatpush3.msra.mxu0 %v544_v25  ;;  %4021 = vmatpush3.msra.mxu1 %v4565_v41  ;;  %v4788_v57 = vand.u32 4294901760, %v959_v53 }
  0xe5   : > { %4011 = vmatprep.subr.mxu0 %v4439_v24  ;;  %4022 = vmatprep.subr.mxu1 %v4439_v24 }
  0xe6   : > { %4012 = vmatpush3.msra.mxu0 %v551_v26  ;;  %4013 = vmatprep.mubr.msk.f32.mxu0 %vm4440_vm0, %v4439_v24  ;;  %v4801_v3 = vsub.f32 %v959_v53, %v4788_v57 }
  0xe7   : > { %4023 = vmatpush3.msra.mxu1 %v4581_v51  ;;  %4014 = vmatmul.mubr.f32.vlgmr.msra.gmra.mxu0 %v4561_v39  ;;  %v940_v51 = vld [vmem:[%s5523_s3 + $0x10] sm:$0xff] }
  0xe8   : > { %4024 = vmatprep.subr.mxu1 %v4439_v24  ;;  %4032 = vmatprep.mubr.msk.f32.mxu1 %vm4440_vm0, %v4439_v24  ;;  %v962_v54 = vsel %vm954_vm2, %v940_v51, 0  ;;  %v4819_v13 = vand.u32 4294901760, %v4801_v3 }
  0xe9   : > { %4025 = vmatpush3.msra.mxu1 %v4598_v61  ;;  %4037 = vmatprep.mubr.f32.mxu0 %v4768_v40  ;;  %v4793_v59 = vand.u32 4294901760, %v962_v54 }
  0xea   : > { %4026 = vmatprep.subr.mxu1 %v4439_v24  ;;  %v1062_v25 = vsub.f32 %v4801_v3, %v4819_v13 }
  0xeb   : > { %4027 = vmatpush3.msra.mxu1 %v4602_v0  ;;  %v943_v0 = vld [vmem:[%s5523_s3 + $0x28] sm:$0xff]  ;;  %v4807_v5 = vsub.f32 %v962_v54, %v4793_v59 }
  0xec   : > { %4028 = vmatprep.subr.mxu1 %v4439_v24  ;;  %v971_v9 = vsel %vm954_vm2, %v943_v0, 0  ;;  %v4854_v38 = vand.u32 4294901760, %v1062_v25 }
  0xed   : > { %4029 = vmatpush3.msra.mxu1 %v4623_v11  ;;  %v945_v11 = vld [vmem:[%s5523_s3 + $0x38] sm:$0xff]  ;;  %v4822_v14 = vand.u32 4294901760, %v4807_v5  ;;  %v4827_v16 = vand.u32 4294901760, %v971_v9 }
  0xee   : > { %4030 = vmatprep.subr.mxu1 %v4439_v24  ;;  %v977_v20 = vsel %vm954_vm2, %v945_v11, 0 }
  0xef   : > { %4031 = vmatpush3.msra.mxu1 %v4630_v15  ;;  %v4825_v15 = vsub.f32 %v965_v62, %v4809_v6  ;;  %v4841_v28 = vsub.f32 %v971_v9, %v4827_v16  ;;  %v4843_v29 = vand.u32 4294901760, %v977_v20  ;;  %v1072_v31 = vsub.f32 %v4807_v5, %v4822_v14 }
  0xf0   : > { %4033 = vmatmul.mubr.f32.vlgmr.msra.gmra.mxu1 %v4561_v39  ;;  %v4917_v9 = vand.u32 4294901760, %v390_v4 }
  0xf1   : > { %4051 = vmatprep.mubr.f32.mxu1 %v4757_v35  ;;  %v4838_v27 = vand.u32 4294901760, %v4825_v15 }
 0x185   : > { %v479_v41 = vpop.f32.mrf.mxu0 }
 0x186   : > { %v480_v56 = vadd.f32 %v479_v41, %v4780_v52 }
 0x187   : > { %v3939_v42 = vpop.f32.mrf.mxu0 }
 0x188   : > { %v1082_v42 = vsub.f32 %v4825_v15, %v4838_v27 }
 0x18a   : > { %v4872_v51 = vand.u32 4294901760, %v1082_v42 }
 0x18c   : > { %v590_v43 = vpop.f32.mrf.mxu1 }
 0x18d   : > { %v591_v1 = vadd.f32 %v590_v43, %v480_v56  ;;  %v4859_v43 = vand.u32 4294901760, %v4841_v28 }
 0x18e   : > { %v3958_v44 = vpop.f32.mrf.mxu1 }
 0x18f   : > { %v4862_v44 = vsub.f32 %v977_v20, %v4843_v29  ;;  %v1102_v53 = vsub.f32 %v4841_v28, %v4859_v43 }
 0x191   : > { %v4877_v54 = vand.u32 4294901760, %v4862_v44  ;;  %v4885_v62 = vand.u32 4294901760, %v1102_v53 }
 0x193   : > { %v1122_v63 = vsub.f32 %v4862_v44, %v4877_v54 }
 0x195   : > { %v678_v45 = vpop.f32.mrf.mxu0 }
 0x196   : > { %v679_v7 = vadd.f32 %v678_v45, %v591_v1  ;;  %v4864_v45 = vand.u32 4294901760, %v1072_v31  ;;  %v4894_v1 = vand.u32 4294901760, %v1122_v63 }
 0x197   : > { %v3977_v46 = vpop.f32.mrf.mxu0 }
 0x198   : > { %v1092_v46 = vsub.f32 %v4830_v18, %v4848_v32 }
 0x19a   : > { %v4880_v55 = vand.u32 4294901760, %v1092_v46 }
 0x19e   : > { %v759_v47 = vpop.f32.mrf.mxu1 }
 0x19f   : > { %v760_v12 = vadd.f32 %v759_v47, %v679_v7  ;;  %v4869_v47 = vand.u32 4294901760, %v4851_v33 }
 0x1a0   : > { %v3996_v50 = vpop.f32.mrf.mxu1 }
 0x1a1   : > { %v1112_v56 = vsub.f32 %v4851_v33, %v4869_v47 }
 0x1a3   : > { %v4890_v0 = vand.u32 4294901760, %v1112_v56 }
 0x1a7   : > { %v854_v61 = vpop.f32.mrf.mxu0 }
 0x1a8   : > { %v855_v17 = vadd.f32 %v854_v61, %v760_v12  ;;  %v384_v12 = vpop.xlane.xlu1 %383 }
 0x1a9   : > { %v4015_v2 = vpop.f32.mrf.mxu0 }
 0x1aa   : > { %v393_v2 = vpop.xlane.xlu0 %392 }
 0x1ab   : > { %v4913_v7 = vand.u32 4294901760, %v393_v2 }
 0x1ac   : > { %v378_v31 = vpop.xlane.xlu1 %377 }
 0x1ad   : > { %v4921_v11 = vsub.f32 %v393_v2, %v4913_v7 }
 0x1ae   : > { %v387_v10 = vpop.xlane.xlu0 %386 }
 0x1af   : > { %v4930_v20 = vand.u32 4294901760, %v387_v10 }
 0x1b0   : > { %v933_v21 = vpop.f32.mrf.mxu1  ;;  %v372_v63 = vpop.xlane.xlu1 %371 }
 0x1b1   : > { %v934_v23 = vadd.f32 %v933_v21, %v855_v17  ;;  %v4928_v17 = vsub.f32 %v390_v4, %v4917_v9  ;;  %v1832_v21 = vand.u32 4294901760, %v4921_v11 }
 0x1b2   : > { %v4034_v26 = vpop.f32.mrf.mxu1  ;;  %v381_v25 = vpop.xlane.xlu0 %380 }
 0x1b3   : > { %v937_v30 = vmax.f32 %v934_v23, 0.0  ;;  %v4933_v23 = vand.u32 4294901760, %v384_v12  ;;  %v1839_v26 = vand.u32 4294901760, %v4928_v17  ;;  %v4952_v42 = vand.u32 4294901760, %v381_v25 }
 0x1b5   : > { %v981_v34 = vsel %vm979_vm3, %v937_v30, 0  ;;  %v4941_v30 = vsub.f32 %v387_v10, %v4930_v20  ;;  %v1840_v46 = vsub.f32 %v4928_v17, %v1839_v26 }
 0x1b6   : > { %v1014_v41 = vand.u32 4294901760, %v981_v34  ;;  %v375_v53 = vpop.xlane.xlu0 %374 }
 0x1b7   : > { %v4973_v2 = vand.u32 4294901760, %v375_v53  ;;  %v1841_v4 = vand.u32 4294901760, %v1840_v46 }
 0x1b8   : > { %v1161_v49 = vsub.f32 %v981_v34, %v1014_v41  ;;  %4035 = vmatprep.subr.mxu0 %v1014_v41  ;;  %v1833_v34 = vsub.f32 %v4921_v11, %v1832_v21 }
 0x1b9   : > { %4036 = vmatpush3.msra.mxu0 %v1014_v41 }
 0x1ba   : > { %4038 = vmatmul.mubr.f32.vlgmr.msra.gmra.mxu0 %v4854_v38  ;;  %4063 = vmatprep.subr.mxu0 %v1161_v49  ;;  %v1162_v50 = vand.u32 4294901760, %v1161_v49  ;;  %v1834_v56 = vand.u32 4294901760, %v1833_v34 }
 0x1bb   : > { %4064 = vmatpush3.msra.mxu0 %v1161_v49  ;;  %4040 = vmatprep.mubr.f32.mxu0 %v4864_v45 }
 0x1bc   : > { %4091 = vmatprep.subr.mxu0 %v1162_v50  ;;  %v1163_v58 = vsub.f32 %v1161_v49, %v1162_v50  ;;  %v5529_v49 = vand.u32 4294901760, %v4941_v30 }
 0x1be   : > { %4041 = vmatmul.mubr.f32.gmra.mxu0 %v4872_v51  ;;  %v1164_v61 = vand.u32 4294901760, %v1163_v58  ;;  %v1847_v10 = vsub.f32 %v4941_v30, %v5529_v49 }
 0x1bf   : > { %4043 = vmatprep.mubr.f32.mxu0 %v4880_v55 }
 0x1c0   : > { %4049 = vmatprep.subr.mxu1 %v1164_v61 }
 0x1c1   : > { %4050 = vmatpush3.msra.mxu1 %v1164_v61  ;;  %v4969_v61 = vsub.f32 %v381_v25, %v4952_v42  ;;  %v4984_v25 = vand.u32 4294901760, %v372_v63 }
 0x1c2   : > { %4044 = vmatmul.mubr.f32.gmra.mxu0 %v4885_v62  ;;  %4052 = vmatmul.mubr.f32.vlgmr.msra.gmra.mxu1 %v4788_v57 }
 0x1c3   : > { %4077 = vmatprep.subr.mxu1 %v1014_v41  ;;  %4046 = vmatprep.mubr.f32.mxu0 %v4890_v0  ;;  %v5531_v46 = vand.u32 4294901760, %v4969_v61 }
 0x1c4   : > { %4078 = vmatpush3.msra.mxu1 %v1014_v41  ;;  %4054 = vmatprep.mubr.f32.mxu1 %v4793_v59 }
 0x1c5   : > { %4105 = vmatprep.subr.mxu1 %v1014_v41 }
 0x1c6   : > { %4047 = vmatmul.mubr.f32.gmra.mxu0 %v4894_v1  ;;  %4055 = vmatmul.mubr.f32.gmra.mxu1 %v4809_v6 }
 0x1c7   : > { %4057 = vmatprep.mubr.f32.mxu1 %v4811_v8  ;;  %4065 = vmatprep.mubr.f32.mxu0 %v4760_v36 }
 0x1ca   : > { %4058 = vmatmul.mubr.f32.gmra.mxu1 %v4827_v16  ;;  %4066 = vmatmul.mubr.f32.vlgmr.msra.gmra.mxu0 %v4801_v3 }
 0x1cb   : > { %4092 = vmatpush3.msra.mxu0 %v1162_v50  ;;  %4060 = vmatprep.mubr.f32.mxu1 %v4832_v19  ;;  %v4962_v50 = vand.u32 4294901760, %v378_v31 }
 0x1cc   : > { %4068 = vmatprep.mubr.f32.mxu0 %v4807_v5  ;;  %4119 = vmatprep.subr.mxu0 %v4439_v24 }
 0x1ce   : > { %4061 = vmatmul.mubr.f32.gmra.mxu1 %v4843_v29  ;;  %4069 = vmatmul.mubr.f32.gmra.mxu0 %v4825_v15 }
 0x1cf   : > { %4071 = vmatprep.mubr.f32.mxu0 %v4830_v18  ;;  %4079 = vmatprep.mubr.f32.mxu1 %v4764_v37 }
 0x1d2   : > { %4072 = vmatmul.mubr.f32.gmra.mxu0 %v4841_v28  ;;  %4080 = vmatmul.mubr.f32.vlgmr.msra.gmra.mxu1 %v4819_v13 }
 0x1d3   : > { %4106 = vmatpush3.msra.mxu1 %v1014_v41  ;;  %4074 = vmatprep.mubr.f32.mxu0 %v4851_v33  ;;  %v4950_v41 = vsub.f32 %v384_v12, %v4933_v23  ;;  %v4981_v12 = vsub.f32 %v378_v31, %v4962_v50  ;;  %v4994_v31 = vsub.f32 %v375_v53, %v4973_v2 }
 0x1d4   : > { %4082 = vmatprep.mubr.f32.mxu1 %v4822_v14  ;;  %4138 = vmatprep.subr.mxu1 %v4439_v24 }
 0x1d5   : > { %v5530_v58 = vand.u32 4294901760, %v4950_v41  ;;  %v1867_v49 = vand.u32 4294901760, %v4981_v12 }
 0x1d6   : > { %4075 = vmatmul.mubr.f32.gmra.mxu0 %v4862_v44  ;;  %4083 = vmatmul.mubr.f32.gmra.mxu1 %v4838_v27 }
 0x1d7   : > { %4085 = vmatprep.mubr.f32.mxu1 %v4848_v32  ;;  %4093 = vmatprep.mubr.f32.mxu0 %v4757_v35  ;;  %v1854_v34 = vsub.f32 %v4950_v41, %v5530_v58  ;;  %v5002_v58 = vsub.f32 %v372_v63, %v4984_v25  ;;  %v1868_v63 = vsub.f32 %v4981_v12, %v1867_v49 }
 0x1d9   : > { %v1855_v53 = vand.u32 4294901760, %v1854_v34  ;;  %v1881_v34 = vand.u32 4294901760, %v5002_v58 }
 0x1da   : > { %4086 = vmatmul.mubr.f32.gmra.mxu1 %v4859_v43  ;;  %4094 = vmatmul.mubr.f32.vlgmr.msra.gmra.mxu0 %v4788_v57 }
 0x1db   : > { %4120 = vmatpush3.msra.mxu0 %v4913_v7  ;;  %4088 = vmatprep.mubr.f32.mxu1 %v4869_v47 }
 0x1dc   : > { %4121 = vmatprep.subr.mxu0 %v4439_v24  ;;  %4096 = vmatprep.mubr.f32.mxu0 %v4793_v59 }
 0x1dd   : > { %4122 = vmatpush3.msra.mxu0 %v4917_v9 }
 0x1de   : > { %4123 = vmatprep.subr.mxu0 %v4439_v24  ;;  %4089 = vmatmul.mubr.f32.gmra.mxu1 %v4877_v54 }
 0x1df   : > { %4097 = vmatmul.mubr.f32.gmra.mxu0 %v4809_v6  ;;  %4107 = vmatprep.mubr.f32.mxu1 %v4757_v35 }
 0x1e0   : > { %4124 = vmatpush3.msra.mxu0 %v4930_v20  ;;  %4099 = vmatprep.mubr.f32.mxu0 %v4811_v8 }
 0x1e1   : > { %4125 = vmatprep.subr.mxu0 %v4439_v24 }
 0x1e2   : > { %4126 = vmatpush3.msra.mxu0 %v4933_v23  ;;  %4108 = vmatmul.mubr.f32.vlgmr.msra.gmra.mxu1 %v4788_v57 }
 0x1e3   : > { %4127 = vmatprep.subr.mxu0 %v4439_v24  ;;  %4100 = vmatmul.mubr.f32.gmra.mxu0 %v4827_v16 }
 0x1e4   : > { %4128 = vmatpush3.msra.mxu0 %v4952_v42  ;;  %4139 = vmatpush3.msra.mxu1 %v1834_v56  ;;  %v1848_v56 = vand.u32 4294901760, %v1847_v10  ;;  %v5532_v10 = vand.u32 4294901760, %v4994_v31 }
 0x1e5   : > { %4129 = vmatprep.subr.mxu0 %v4439_v24  ;;  %4140 = vmatprep.subr.mxu1 %v4439_v24 }
 0x1e6   : > { %4130 = vmatpush3.msra.mxu0 %v4962_v50  ;;  %4141 = vmatpush3.msra.mxu1 %v1841_v4  ;;  %v1861_v4 = vsub.f32 %v4969_v61, %v5531_v46  ;;  %v1875_v46 = vsub.f32 %v4994_v31, %v5532_v10 }
 0x1e7   : > { %4102 = vmatprep.mubr.f32.mxu0 %v4832_v19  ;;  %4110 = vmatprep.mubr.f32.mxu1 %v4793_v59 }
 0x1e8   : > { %4131 = vmatprep.subr.mxu0 %v4439_v24  ;;  %4142 = vmatprep.subr.mxu1 %v4439_v24  ;;  %v1876_v10 = vand.u32 4294901760, %v1875_v46 }
 0x1e9   : > { %4103 = vmatmul.mubr.f32.gmra.mxu0 %v4843_v29  ;;  %4111 = vmatmul.mubr.f32.gmra.mxu1 %v4809_v6 }
 0x1ea   : > { %4132 = vmatpush3.msra.mxu0 %v4973_v2  ;;  %4143 = vmatpush3.msra.mxu1 %v1848_v56  ;;  %v1862_v56 = vand.u32 4294901760, %v1861_v4  ;;  %v1882_v4 = vsub.f32 %v5002_v58, %v1881_v34 }
 0x1eb   : > { %4133 = vmatprep.subr.mxu0 %v4439_v24  ;;  %4144 = vmatprep.subr.mxu1 %v4439_v24 }
 0x1ec   : > { %4134 = vmatpush3.msra.mxu0 %v4984_v25  ;;  %4145 = vmatpush3.msra.mxu1 %v1855_v53  ;;  %v1869_v53 = vand.u32 4294901760, %v1868_v63 }
 0x1ed   : > { %4113 = vmatprep.mubr.f32.mxu1 %v4811_v8  ;;  %4135 = vmatprep.mubr.msk.f32.mxu0 %vm4440_vm0, %v4439_v24 }
 0x1ee   : > { %4146 = vmatprep.subr.mxu1 %v4439_v24  ;;  %4157 = vmatprep.subr.mxu0 %v4439_v24 }
 0x1ef   : > { %4114 = vmatmul.mubr.f32.gmra.mxu1 %v4827_v16  ;;  %4136 = vmatmul.mubr.f32.vlgmr.msra.gmra.mxu0 %v4647_v22  ;;  %v1883_v22 = vand.u32 4294901760, %v1882_v4 }
 0x1f0   : > { %4147 = vmatpush3.msra.mxu1 %v1862_v56  ;;  %4158 = vmatpush3.msra.mxu0 %v4921_v11  ;;  %v5541_v11 = vand.u32 4294901760, %v4950_v41  ;;  %v5162_v56 = vld [vmem:[%s5524_s4 + $0x38] sm:$0xff] }
 0x1f1   : > { %4148 = vmatprep.subr.mxu1 %v4439_v24  ;;  %4159 = vmatprep.subr.mxu0 %v4439_v24  ;;  %5549 = vst [vmem:[#allocation11_spill] sm:$0xff] %v5162_v56 }
 0x1f2   : > { %4149 = vmatpush3.msra.mxu1 %v1869_v53  ;;  %4160 = vmatpush3.msra.mxu0 %v4928_v17  ;;  %v5542_v17 = vand.u32 4294901760, %v4969_v61 }
 0x1f3   : > { %4116 = vmatprep.mubr.f32.mxu1 %v4832_v19  ;;  %4150 = vmatprep.subr.mxu1 %v4439_v24 }
 0x1f4   : > { %4161 = vmatprep.subr.mxu0 %v4439_v24  ;;  %4117 = vmatmul.mubr.f32.gmra.mxu1 %v4843_v29 }
 0x1f5   : > { %4151 = vmatpush3.msra.mxu1 %v1876_v10  ;;  %4162 = vmatpush3.msra.mxu0 %v4941_v30 }
 0x1f6   : > { %4152 = vmatprep.subr.mxu1 %v4439_v24  ;;  %4163 = vmatprep.subr.mxu0 %v4439_v24 }
 0x1f7   : > { %4153 = vmatpush3.msra.mxu1 %v1883_v22  ;;  %4164 = vmatpush3.msra.mxu0 %v4950_v41 }
 0x1f8   : > { %4154 = vmatprep.mubr.msk.f32.mxu1 %vm4440_vm0, %v4439_v24  ;;  %4165 = vmatprep.subr.mxu0 %v4439_v24 }
 0x1f9   : > { %4176 = vmatprep.subr.mxu1 %v4439_v24  ;;  %4155 = vmatmul.mubr.f32.vlgmr.msra.gmra.mxu1 %v4561_v39 }
 0x1fa   : > { %4166 = vmatpush3.msra.mxu0 %v4969_v61  ;;  %4177 = vmatpush3.msra.mxu1 %v4913_v7 }
 0x1fb   : > { %4167 = vmatprep.subr.mxu0 %v4439_v24  ;;  %4178 = vmatprep.subr.mxu1 %v4439_v24 }
 0x1fc   : > { %4168 = vmatpush3.msra.mxu0 %v4981_v12  ;;  %4179 = vmatpush3.msra.mxu1 %v4917_v9 }
 0x1fd   : > { %4169 = vmatprep.subr.mxu0 %v4439_v24  ;;  %4180 = vmatprep.subr.mxu1 %v4439_v24 }
 0x1fe   : > { %4170 = vmatpush3.msra.mxu0 %v4994_v31  ;;  %4181 = vmatpush3.msra.mxu1 %v4930_v20 }
 0x1ff   : > { %4171 = vmatprep.subr.mxu0 %v4439_v24  ;;  %4182 = vmatprep.subr.mxu1 %v4439_v24 }
 0x200   : > { %4172 = vmatpush3.msra.mxu0 %v5002_v58  ;;  %4173 = vmatprep.mubr.msk.f32.mxu0 %vm4440_vm0, %v4439_v24  ;;  %v5150_v58 = vld [vmem:[%s5524_s4 + $0x28] sm:$0xff] }
 0x201   : > { %4183 = vmatpush3.msra.mxu1 %v4933_v23  ;;  %4174 = vmatmul.mubr.f32.vlgmr.msra.gmra.mxu0 %v4576_v48  ;;  %v5540_v48 = vand.u32 4294901760, %v4941_v30  ;;  %5547 = vst [vmem:[#allocation9_spill] sm:$0xff] %v5150_v58 }
 0x202   : > { %4184 = vmatprep.subr.mxu1 %v4439_v24  ;;  %4195 = vmatprep.subr.mxu0 %v4439_v24 }
 0x203   : > { %4185 = vmatpush3.msra.mxu1 %v4952_v42  ;;  %4196 = vmatpush3.msra.mxu0 %v1832_v21 }
 0x204   : > { %4186 = vmatprep.subr.mxu1 %v4439_v24  ;;  %4197 = vmatprep.subr.mxu0 %v4439_v24 }
 0x205   : > { %4187 = vmatpush3.msra.mxu1 %v4962_v50  ;;  %4198 = vmatpush3.msra.mxu0 %v1839_v26 }
 0x206   : > { %4188 = vmatprep.subr.mxu1 %v4439_v24  ;;  %4199 = vmatprep.subr.mxu0 %v4439_v24 }
 0x207   : > { %4189 = vmatpush3.msra.mxu1 %v4973_v2  ;;  %4200 = vmatpush3.msra.mxu0 %v5540_v48 }
 0x208   : > { %4190 = vmatprep.subr.mxu1 %v4439_v24  ;;  %4201 = vmatprep.subr.mxu0 %v4439_v24 }
 0x209   : > { %4191 = vmatpush3.msra.mxu1 %v4984_v25  ;;  %4192 = vmatprep.mubr.msk.f32.mxu1 %vm4440_vm0, %v4439_v24 }
 0x20a   : > { %4202 = vmatpush3.msra.mxu0 %v5541_v11  ;;  %4193 = vmatmul.mubr.f32.vlgmr.msra.gmra.mxu1 %v4596_v60  ;;  %v5543_v60 = vand.u32 4294901760, %v4994_v31 }
 0x20b   : > { %4203 = vmatprep.subr.mxu0 %v4439_v24  ;;  %4214 = vmatprep.subr.mxu1 %v4439_v24 }
 0x20c   : > { %4204 = vmatpush3.msra.mxu0 %v5542_v17  ;;  %4215 = vmatpush3.msra.mxu1 %v4913_v7 }
 0x20d   : > { %4205 = vmatprep.subr.mxu0 %v4439_v24  ;;  %4216 = vmatprep.subr.mxu1 %v4439_v24 }
 0x20e   : > { %4206 = vmatpush3.msra.mxu0 %v1867_v49  ;;  %4217 = vmatpush3.msra.mxu1 %v4917_v9 }
 0x20f   : > { %4207 = vmatprep.subr.mxu0 %v4439_v24  ;;  %4218 = vmatprep.subr.mxu1 %v4439_v24 }
 0x210   : > { %4208 = vmatpush3.msra.mxu0 %v5543_v60  ;;  %4219 = vmatpush3.msra.mxu1 %v4930_v20 }
 0x211   : > { %4209 = vmatprep.subr.mxu0 %v4439_v24  ;;  %4220 = vmatprep.subr.mxu1 %v4439_v24 }
 0x212   : > { %4210 = vmatpush3.msra.mxu0 %v1881_v34  ;;  %4211 = vmatprep.mubr.msk.f32.mxu0 %vm4440_vm0, %v4439_v24  ;;  %v5157_v34 = vld [vmem:[%s5524_s4 + $0x20] sm:$0xff] }
 0x213   : > { %4221 = vmatpush3.msra.mxu1 %v4933_v23  ;;  %4212 = vmatmul.mubr.f32.vlgmr.msra.gmra.mxu0 %v4561_v39  ;;  %5548 = vst [vmem:[#allocation10_spill] sm:$0xff] %v5157_v34 }
 0x214   : > { %4222 = vmatprep.subr.mxu1 %v4439_v24  ;;  %4230 = vmatprep.mubr.msk.f32.mxu1 %vm4440_vm0, %v4439_v24  ;;  %vm3491_vm0 = vcmask 777216  }
 0x215   : > { %4223 = vmatpush3.msra.mxu1 %v4952_v42  ;;  %4235 = vmatprep.mubr.f32.mxu0 %v4768_v40  ;;  %v5127_v40 = vld [vmem:[%s5524_s4 + $0x8] sm:$0xff] }
 0x216   : > { %4224 = vmatprep.subr.mxu1 %v4439_v24 }
 0x217   : > { %4225 = vmatpush3.msra.mxu1 %v4962_v50  ;;  %v5145_v50 = vld [vmem:[%s5524_s4 + $0x10] sm:$0xff] }
 0x218   : > { %4226 = vmatprep.subr.mxu1 %v4439_v24  ;;  %5546 = vst [vmem:[#allocation8_spill] sm:$0xff] %v5145_v50 }
 0x219   : > { %4227 = vmatpush3.msra.mxu1 %v4973_v2 }
 0x21a   : > { %4228 = vmatprep.subr.mxu1 %v4439_v24  ;;  %v5133_v24 = vld [vmem:[%s5524_s4] sm:$0xff] }
 0x21b   : > { %4229 = vmatpush3.msra.mxu1 %v4984_v25  ;;  %5544 = vst [vmem:[#allocation6_spill] sm:$0xff] %v5133_v24 }
 0x21c   : > { %4231 = vmatmul.mubr.f32.vlgmr.msra.gmra.mxu1 %v4561_v39  ;;  %v5138_v39 = vld [vmem:[%s5524_s4 + $0x18] sm:$0xff] }
 0x21d   : > { %4249 = vmatprep.mubr.f32.mxu1 %v4757_v35  ;;  %5545 = vst [vmem:[#allocation7_spill] sm:$0xff] %v5138_v39 }
 0x27a   : > { %v4039_v7 = vpop.f32.mrf.mxu0 }
 0x27b   : > { %v1066_v21 = vadd.f32 %v4039_v7, %v5127_v40 }
 0x27c   : > { %v1055_v9 = vpop.f32.mrf.mxu0 }
 0x27d   : > { %v1056_v41 = vadd.f32 %v1055_v9, %v5133_v24 }
 0x27e   : > { %v4042_v20 = vpop.f32.mrf.mxu0 }
 0x27f   : > { %v1086_v42 = vadd.f32 %v4042_v20, %v5138_v39  ;;  %v5169_v20 = vld [vmem:[%s5524_s4 + $0x30] sm:$0xff] }
 0x280   : > { %v1075_v23 = vpop.f32.mrf.mxu0 }
 0x281   : > { %v1076_v31 = vadd.f32 %v1075_v23, %v5145_v50 }
 0x282   : > { %v4045_v26 = vpop.f32.mrf.mxu0  ;;  %v4053_v30 = vpop.f32.mrf.mxu1 }
 0x283   : > { %v1208_v49 = vadd.f32 %v4053_v30, %v1066_v21  ;;  %v1106_v10 = vadd.f32 %v4045_v26, %v5150_v58 }
 0x284   : > { %v1095_v61 = vpop.f32.mrf.mxu0  ;;  %v1201_v2 = vpop.f32.mrf.mxu1 }
 0x285   : > { %v1202_v12 = vadd.f32 %v1201_v2, %v1056_v41  ;;  %v1096_v17 = vadd.f32 %v1095_v61, %v5157_v34 }
 0x286   : > { %v4048_v25 = vpop.f32.mrf.mxu0  ;;  %v4056_v46 = vpop.f32.mrf.mxu1 }
 0x287   : > { %v1220_v63 = vadd.f32 %v4056_v46, %v1086_v42  ;;  %v1126_v60 = vadd.f32 %v4048_v25, %v5162_v56 }
 0x288   : > { %v1115_v53 = vpop.f32.mrf.mxu0  ;;  %v1213_v4 = vpop.f32.mrf.mxu1 }
 0x289   : > { %v1214_v22 = vadd.f32 %v1213_v4, %v1076_v31  ;;  %v1116_v2 = vadd.f32 %v1115_v53, %v5169_v20 }
 0x28a   : > { %v4059_v48 = vpop.f32.mrf.mxu1  ;;  %v4067_v11 = vpop.f32.mrf.mxu0 }
 0x28b   : > { %v1232_v7 = vadd.f32 %v4059_v48, %v1106_v10  ;;  %v1325_v9 = vadd.f32 %v4067_v11, %v1208_v49 }
 0x28c   : > { %v1225_v21 = vpop.f32.mrf.mxu1  ;;  %v1317_v23 = vpop.f32.mrf.mxu0 }
 0x28d   : > { %v1226_v26 = vadd.f32 %v1225_v21, %v1096_v17  ;;  %v1318_v30 = vadd.f32 %v1317_v23, %v1202_v12 }
 0x28e   : > { %v4062_v41 = vpop.f32.mrf.mxu1  ;;  %v4070_v42 = vpop.f32.mrf.mxu0 }
 0x28f   : > { %v1244_v46 = vadd.f32 %v4062_v41, %v1126_v60  ;;  %v1339_v31 = vadd.f32 %v4070_v42, %v1220_v63 }
 0x290   : > { %v1237_v61 = vpop.f32.mrf.mxu1  ;;  %v1331_v4 = vpop.f32.mrf.mxu0 }
 0x291   : > { %v1238_v25 = vadd.f32 %v1237_v61, %v1116_v2  ;;  %v1332_v10 = vadd.f32 %v1331_v4, %v1214_v22 }
 0x292   : > { %v4073_v49 = vpop.f32.mrf.mxu0  ;;  %v4081_v48 = vpop.f32.mrf.mxu1 }
 0x293   : > { %v1353_v11 = vadd.f32 %v4073_v49, %v1232_v7  ;;  %v1449_v56 = vadd.f32 %v4081_v48, %v1325_v9 }
 0x294   : > { %v1345_v34 = vpop.f32.mrf.mxu0  ;;  %v1440_v50 = vpop.f32.mrf.mxu1 }
 0x295   : > { %v1346_v58 = vadd.f32 %v1345_v34, %v1226_v26  ;;  %v1441_v39 = vadd.f32 %v1440_v50, %v1318_v30 }
 0x296   : > { %v4076_v17 = vpop.f32.mrf.mxu0  ;;  %v4084_v12 = vpop.f32.mrf.mxu1 }
 0x297   : > { %v1367_v21 = vadd.f32 %v4076_v17, %v1244_v46  ;;  %v1465_v23 = vadd.f32 %v4084_v12, %v1339_v31 }
 0x298   : > { %v1359_v24 = vpop.f32.mrf.mxu0  ;;  %v1456_v53 = vpop.f32.mrf.mxu1 }
 0x299   : > { %v1360_v60 = vadd.f32 %v1359_v24, %v1238_v25  ;;  %v1457_v63 = vadd.f32 %v1456_v53, %v1332_v10 }
 0x29a   : > { %v4087_v41 = vpop.f32.mrf.mxu1  ;;  %v4095_v42 = vpop.f32.mrf.mxu0 }
 0x29b   : > { %v1481_v2 = vadd.f32 %v4087_v41, %v1353_v11  ;;  %v1577_v22 = vadd.f32 %v4095_v42, %v1449_v56 }
 0x29c   : > { %v1472_v61 = vpop.f32.mrf.mxu1  ;;  %v1570_v4 = vpop.f32.mrf.mxu0 }
 0x29d   : > { %v1473_v7 = vadd.f32 %v1472_v61, %v1346_v58  ;;  %v1571_v9 = vadd.f32 %v1570_v4, %v1441_v39 }
 0x29e   : > { %v4090_v49 = vpop.f32.mrf.mxu1 }
 0x29f   : > { %v1497_v48 = vadd.f32 %v4090_v49, %v1367_v21  ;;  %v4098_v34 = vpop.f32.mrf.mxu0 }
 0x2a0   : > { %v1589_v50 = vadd.f32 %v4098_v34, %v1465_v23  ;;  %v1488_v26 = vpop.f32.mrf.mxu1 }
 0x2a1   : > { %v1489_v30 = vadd.f32 %v1488_v26, %v1360_v60  ;;  %v1582_v46 = vpop.f32.mrf.mxu0 }
 0x2a2   : > { %v1583_v31 = vadd.f32 %v1582_v46, %v1457_v63  ;;  %v4109_v17 = vpop.f32.mrf.mxu1 }
 0x2a3   : > { %v4101_v12 = vpop.f32.mrf.mxu0  ;;  %v5172_v24 = vadd.f32 %v4109_v17, %v1577_v22 }
 0x2a4   : > { %v1601_v25 = vadd.f32 %v4101_v12, %v1481_v2  ;;  %v1684_v10 = vpop.f32.mrf.mxu1 }
 0x2a5   : > { %v1594_v11 = vpop.f32.mrf.mxu0  ;;  %v5174_v56 = vadd.f32 %v1684_v10, %v1571_v9 }
 0x2a6   : > { %v1595_v53 = vadd.f32 %v1594_v11, %v1473_v7 }
 0x2a9   : > { %v4104_v58 = vpop.f32.mrf.mxu0  ;;  %v4112_v39 = vpop.f32.mrf.mxu1 }
 0x2aa   : > { %v1613_v41 = vadd.f32 %v4104_v58, %v1497_v48  ;;  %v5176_v21 = vadd.f32 %v4112_v39, %v1589_v50 }
 0x2ab   : > { %v1606_v23 = vpop.f32.mrf.mxu0  ;;  %v1696_v42 = vpop.f32.mrf.mxu1 }
 0x2ac   : > { %v1607_v60 = vadd.f32 %v1606_v23, %v1489_v30  ;;  %v5178_v61 = vadd.f32 %v1696_v42, %v1583_v31 }
 0x2af   : > { %v4115_v63 = vpop.f32.mrf.mxu1  ;;  %v1809_v4 = vpop.f32.mrf.mxu0 }
 0x2b0   : > { %v5180_v22 = vadd.f32 %v4115_v63, %v1601_v25  ;;  %v1810_v10 = vadd.f32 %v1809_v4, %v4780_v52 }
 0x2b1   : > { %v1708_v2 = vpop.f32.mrf.mxu1  ;;  %v4137_v49 = vpop.f32.mrf.mxu0 }
 0x2b2   : > { %v5182_v34 = vadd.f32 %v1708_v2, %v1595_v53 }
 0x2b4   : > { %v4118_v9 = vpop.f32.mrf.mxu1 }
 0x2b5   : > { %v5184_v7 = vadd.f32 %v4118_v9, %v1613_v41 }
 0x2b6   : > { %v1720_v26 = vpop.f32.mrf.mxu1 }
 0x2b7   : > { %v5186_v48 = vadd.f32 %v1720_v26, %v1607_v60 }
 0x2b9   : > { %v1920_v50 = vpop.f32.mrf.mxu1 }
 0x2ba   : > { %v1921_v11 = vadd.f32 %v1920_v50, %v1810_v10 }
 0x2bb   : > { %v4156_v46 = vpop.f32.mrf.mxu1 }
 0x2bc   : > { %v5550_v46 = vld [vmem:[#allocation6_spill] sm:$0xff] }
 0x2c1   : > { %v2008_v17 = vpop.f32.mrf.mxu0 }
 0x2c2   : > { %v2009_v39 = vadd.f32 %v2008_v17, %v1921_v11 }
 0x2c3   : > { %v4175_v30 = vpop.f32.mrf.mxu0 }
 0x2c4   : > { %v5551_v30 = vld [vmem:[#allocation7_spill] sm:$0xff] }
 0x2ca   : > { %v2089_v31 = vpop.f32.mrf.mxu1 }
 0x2cb   : > { %v2090_v53 = vadd.f32 %v2089_v31, %v2009_v39 }
 0x2cc   : > { %v4194_v12 = vpop.f32.mrf.mxu1 }
 0x2d3   : > { %v2184_v25 = vpop.f32.mrf.mxu0 }
 0x2d4   : > { %v2185_v23 = vadd.f32 %v2184_v25, %v2090_v53 }
 0x2d5   : > { %v4213_v58 = vpop.f32.mrf.mxu0 }
 0x2dc   : > { %v2263_v42 = vpop.f32.mrf.mxu1 }
 0x2dd   : > { %v2264_v41 = vadd.f32 %v2263_v42, %v2185_v23  ;;  %v5552_v23 = vld [vmem:[#allocation9_spill] sm:$0xff] }
 0x2de   : > { %v4232_v63 = vpop.f32.mrf.mxu1 }
 0x2df   : > { %v2267_v2 = vmax.f32 %v2264_v41, 0.0 }
 0x2e1   : > { %v2269_v60 = vsel %vm979_vm3, %v2267_v2, 0  ;;  %v5553_v2 = vld [vmem:[#allocation8_spill] sm:$0xff] }
 0x2e2   : > { %v2302_v49 = vand.u32 4294901760, %v2269_v60 }
 0x2e4   : > { %v2449_v9 = vsub.f32 %v2269_v60, %v2302_v49  ;;  %4233 = vmatprep.subr.mxu0 %v2302_v49 }
 0x2e5   : > { %4234 = vmatpush3.msra.mxu0 %v2302_v49 }
 0x2e6   : > { %4236 = vmatmul.mubr.f32.vlgmr.msra.gmra.mxu0 %v4854_v38  ;;  %4261 = vmatprep.subr.mxu0 %v2449_v9  ;;  %v2450_v52 = vand.u32 4294901760, %v2449_v9 }
 0x2e7   : > { %4262 = vmatpush3.msra.mxu0 %v2449_v9  ;;  %4238 = vmatprep.mubr.f32.mxu0 %v4864_v45 }
 0x2e8   : > { %4289 = vmatprep.subr.mxu0 %v2450_v52  ;;  %v2451_v4 = vsub.f32 %v2449_v9, %v2450_v52 }
 0x2ea   : > { %4239 = vmatmul.mubr.f32.gmra.mxu0 %v4872_v51  ;;  %v2452_v26 = vand.u32 4294901760, %v2451_v4 }
 0x2eb   : > { %4241 = vmatprep.mubr.f32.mxu0 %v4880_v55 }
 0x2ec   : > { %4247 = vmatprep.subr.mxu1 %v2452_v26 }
 0x2ed   : > { %4248 = vmatpush3.msra.mxu1 %v2452_v26 }
 0x2ee   : > { %4242 = vmatmul.mubr.f32.gmra.mxu0 %v4885_v62  ;;  %4250 = vmatmul.mubr.f32.vlgmr.msra.gmra.mxu1 %v4788_v57 }
 0x2ef   : > { %4275 = vmatprep.subr.mxu1 %v2302_v49  ;;  %4244 = vmatprep.mubr.f32.mxu0 %v4890_v0 }
 0x2f0   : > { %4276 = vmatpush3.msra.mxu1 %v2302_v49  ;;  %4252 = vmatprep.mubr.f32.mxu1 %v4793_v59 }
 0x2f1   : > { %4303 = vmatprep.subr.mxu1 %v2302_v49 }
 0x2f2   : > { %4245 = vmatmul.mubr.f32.gmra.mxu0 %v4894_v1  ;;  %4253 = vmatmul.mubr.f32.gmra.mxu1 %v4809_v6 }
 0x2f3   : > { %4255 = vmatprep.mubr.f32.mxu1 %v4811_v8  ;;  %4263 = vmatprep.mubr.f32.mxu0 %v4760_v36 }
 0x2f6   : > { %4256 = vmatmul.mubr.f32.gmra.mxu1 %v4827_v16  ;;  %4264 = vmatmul.mubr.f32.vlgmr.msra.gmra.mxu0 %v4801_v3 }
 0x2f7   : > { %4290 = vmatpush3.msra.mxu0 %v2450_v52  ;;  %4258 = vmatprep.mubr.f32.mxu1 %v4832_v19 }
 0x2f8   : > { %4266 = vmatprep.mubr.f32.mxu0 %v4807_v5 }
 0x2fa   : > { %4259 = vmatmul.mubr.f32.gmra.mxu1 %v4843_v29  ;;  %4267 = vmatmul.mubr.f32.gmra.mxu0 %v4825_v15 }
 0x2fb   : > { %4269 = vmatprep.mubr.f32.mxu0 %v4830_v18  ;;  %4277 = vmatprep.mubr.f32.mxu1 %v4764_v37 }
 0x2fe   : > { %4270 = vmatmul.mubr.f32.gmra.mxu0 %v4841_v28  ;;  %4278 = vmatmul.mubr.f32.vlgmr.msra.gmra.mxu1 %v4819_v13 }
 0x2ff   : > { %4304 = vmatpush3.msra.mxu1 %v2302_v49  ;;  %4272 = vmatprep.mubr.f32.mxu0 %v4851_v33 }
 0x300   : > { %4280 = vmatprep.mubr.f32.mxu1 %v4822_v14 }
 0x302   : > { %4273 = vmatmul.mubr.f32.gmra.mxu0 %v4862_v44  ;;  %4281 = vmatmul.mubr.f32.gmra.mxu1 %v4838_v27 }
 0x303   : > { %4283 = vmatprep.mubr.f32.mxu1 %v4848_v32  ;;  %4291 = vmatprep.mubr.f32.mxu0 %v4757_v35 }
 0x306   : > { %4284 = vmatmul.mubr.f32.gmra.mxu1 %v4859_v43  ;;  %4292 = vmatmul.mubr.f32.vlgmr.msra.gmra.mxu0 %v4788_v57 }
 0x307   : > { %4286 = vmatprep.mubr.f32.mxu1 %v4869_v47  ;;  %4294 = vmatprep.mubr.f32.mxu0 %v4793_v59 }
 0x30a   : > { %4287 = vmatmul.mubr.f32.gmra.mxu1 %v4877_v54  ;;  %4295 = vmatmul.mubr.f32.gmra.mxu0 %v4809_v6 }
 0x30b   : > { %4297 = vmatprep.mubr.f32.mxu0 %v4811_v8  ;;  %4305 = vmatprep.mubr.f32.mxu1 %v4757_v35  ;;  %v4441_v35 = vmov 0  }
 0x30c   : > { %4354 = vset.pattern.permute.xlu1 %v4441_v35  ;;  %4353 = vset.pattern.permute.xlu0 %v4441_v35  ;;  %v5554_v35 = vld [vmem:[#allocation10_spill] sm:$0xff] }
 0x30e   : > { %4298 = vmatmul.mubr.f32.gmra.mxu0 %v4827_v16  ;;  %4306 = vmatmul.mubr.f32.vlgmr.msra.gmra.mxu1 %v4788_v57 }
 0x30f   : > { %4300 = vmatprep.mubr.f32.mxu0 %v4832_v19  ;;  %4308 = vmatprep.mubr.f32.mxu1 %v4793_v59 }
 0x312   : > { %4301 = vmatmul.mubr.f32.gmra.mxu0 %v4843_v29  ;;  %4309 = vmatmul.mubr.f32.gmra.mxu1 %v4809_v6 }
 0x313   : > { %4311 = vmatprep.mubr.f32.mxu1 %v4811_v8 }
 0x316   : > { %4312 = vmatmul.mubr.f32.gmra.mxu1 %v4827_v16 }
 0x317   : > { %4314 = vmatprep.mubr.f32.mxu1 %v4832_v19 }
 0x31a   : > { %4315 = vmatmul.mubr.f32.gmra.mxu1 %v4843_v29 }
 0x3a6   : > { %v4237_v36 = vpop.f32.mrf.mxu0 }
 0x3a7   : > { %v2354_v55 = vadd.f32 %v4237_v36, %v5127_v40 }
 0x3a8   : > { %v2343_v37 = vpop.f32.mrf.mxu0 }
 0x3a9   : > { %v2344_v17 = vadd.f32 %v2343_v37, %v5550_v46 }
 0x3aa   : > { %v4240_v57 = vpop.f32.mrf.mxu0 }
 0x3ab   : > { %v2374_v31 = vadd.f32 %v4240_v57, %v5551_v30 }
 0x3ac   : > { %v2363_v3 = vpop.f32.mrf.mxu0 }
 0x3ad   : > { %v2364_v60 = vadd.f32 %v2363_v3, %v5553_v2 }
 0x3ae   : > { %v4243_v59 = vpop.f32.mrf.mxu0  ;;  %v4251_v5 = vpop.f32.mrf.mxu1 }
 0x3af   : > { %v2496_v12 = vadd.f32 %v4251_v5, %v2354_v55  ;;  %v2394_v42 = vadd.f32 %v4243_v59, %v5552_v23  ;;  %v5555_v59 = vld [vmem:[#allocation11_spill] sm:$0xff] }
 0x3b0   : > { %v2383_v13 = vpop.f32.mrf.mxu0  ;;  %v2489_v14 = vpop.f32.mrf.mxu1 }
 0x3b1   : > { %v2490_v11 = vadd.f32 %v2489_v14, %v2344_v17  ;;  %v2384_v36 = vadd.f32 %v2383_v13, %v5554_v35 }
 0x3b2   : > { %v4246_v6 = vpop.f32.mrf.mxu0  ;;  %v4254_v15 = vpop.f32.mrf.mxu1 }
 0x3b3   : > { %v2508_v41 = vadd.f32 %v4254_v15, %v2374_v31  ;;  %v2414_v15 = vadd.f32 %v4246_v6, %v5555_v59 }
 0x3b4   : > { %v2403_v8 = vpop.f32.mrf.mxu0  ;;  %v2501_v18 = vpop.f32.mrf.mxu1 }
 0x3b5   : > { %v2502_v37 = vadd.f32 %v2501_v18, %v2364_v60  ;;  %v2404_v13 = vadd.f32 %v2403_v8, %v5169_v20 }
 0x3b6   : > { %v4257_v16 = vpop.f32.mrf.mxu1  ;;  %v4265_v27 = vpop.f32.mrf.mxu0 }
 0x3b7   : > { %v2613_v58 = vadd.f32 %v4265_v27, %v2496_v12  ;;  %v2520_v14 = vadd.f32 %v4257_v16, %v2394_v42 }
 0x3b8   : > { %v2513_v19 = vpop.f32.mrf.mxu1  ;;  %v2605_v28 = vpop.f32.mrf.mxu0 }
 0x3b9   : > { %v2606_v63 = vadd.f32 %v2605_v28, %v2490_v11  ;;  %v2514_v28 = vadd.f32 %v2513_v19, %v2384_v36 }
 0x3ba   : > { %v4260_v29 = vpop.f32.mrf.mxu1  ;;  %v4268_v32 = vpop.f32.mrf.mxu0 }
 0x3bb   : > { %v2627_v52 = vadd.f32 %v4268_v32, %v2508_v41  ;;  %v2532_v6 = vadd.f32 %v4260_v29, %v2414_v15 }
 0x3bc   : > { %v2525_v33 = vpop.f32.mrf.mxu1  ;;  %v2619_v38 = vpop.f32.mrf.mxu0 }
 0x3bd   : > { %v2526_v19 = vadd.f32 %v2525_v33, %v2404_v13 }
 0x3be   : > { %v4271_v43 = vpop.f32.mrf.mxu0  ;;  %v4279_v44 = vpop.f32.mrf.mxu1 }
 0x3bf   : > { %v2737_v40 = vadd.f32 %v4279_v44, %v2613_v58  ;;  %v2620_v44 = vadd.f32 %v2619_v38, %v2502_v37  ;;  %v2641_v30 = vadd.f32 %v4271_v43, %v2520_v14 }
 0x3c0   : > { %v2633_v45 = vpop.f32.mrf.mxu0  ;;  %v2728_v47 = vpop.f32.mrf.mxu1 }
 0x3c1   : > { %v2729_v4 = vadd.f32 %v2728_v47, %v2606_v63  ;;  %v2634_v18 = vadd.f32 %v2633_v45, %v2514_v28 }
 0x3c2   : > { %v4274_v51 = vpop.f32.mrf.mxu0  ;;  %v4282_v54 = vpop.f32.mrf.mxu1 }
 0x3c3   : > { %v2753_v27 = vadd.f32 %v4282_v54, %v2627_v52  ;;  %v2655_v20 = vadd.f32 %v4274_v51, %v2532_v6 }
 0x3c4   : > { %v2647_v62 = vpop.f32.mrf.mxu0  ;;  %v2744_v0 = vpop.f32.mrf.mxu1 }
 0x3c5   : > { %v2648_v8 = vadd.f32 %v2647_v62, %v2526_v19 }
 0x3c6   : > { %v4285_v1 = vpop.f32.mrf.mxu1  ;;  %v4293_v50 = vpop.f32.mrf.mxu0 }
 0x3c7   : > { %v2865_v26 = vadd.f32 %v4293_v50, %v2737_v40  ;;  %v2745_v50 = vadd.f32 %v2744_v0, %v2620_v44  ;;  %v2769_v16 = vadd.f32 %v4285_v1, %v2641_v30 }
 0x3c8   : > { %v2760_v10 = vpop.f32.mrf.mxu1  ;;  %v2858_v25 = vpop.f32.mrf.mxu0 }
 0x3c9   : > { %v2859_v55 = vadd.f32 %v2858_v25, %v2729_v4  ;;  %v2761_v38 = vadd.f32 %v2760_v10, %v2634_v18 }
 0x3ca   : > { %v4288_v39 = vpop.f32.mrf.mxu1  ;;  %v4296_v53 = vpop.f32.mrf.mxu0 }
 0x3cb   : > { %v2877_v31 = vadd.f32 %v4296_v53, %v2753_v27  ;;  %v2785_v63 = vadd.f32 %v4288_v39, %v2655_v20  ;;  %v4396_v20 = vld [vmem:[%s4534_s17 + $0x8] sm:$0xff] }
 0x3cc   : > { %v2776_v49 = vpop.f32.mrf.mxu1  ;;  %v2870_v9 = vpop.f32.mrf.mxu0 }
 0x3cd   : > { %v2871_v58 = vadd.f32 %v2870_v9, %v2745_v50  ;;  %v2777_v40 = vadd.f32 %v2776_v49, %v2648_v8 }
 0x3ce   : > { %v4299_v57 = vpop.f32.mrf.mxu0  ;;  %v4307_v5 = vpop.f32.mrf.mxu1 }
 0x3cf   : > { %v2979_v46 = vadd.f32 %v4307_v5, %v2865_v26  ;;  %v2889_v53 = vadd.f32 %v4299_v57, %v2769_v16 }
 0x3d0   : > { %v2882_v17 = vpop.f32.mrf.mxu0  ;;  %v2972_v3 = vpop.f32.mrf.mxu1 }
 0x3d1   : > { %v3019_v32 = vadd.f32 %v2979_v46, %v5172_v24  ;;  %v2973_v47 = vadd.f32 %v2972_v3, %v2859_v55  ;;  %v2883_v1 = vadd.f32 %v2882_v17, %v2761_v38 }
 0x3d2   : > { %v4310_v12 = vpop.f32.mrf.mxu1  ;;  %v4302_v23 = vpop.f32.mrf.mxu0 }
 0x3d3   : > { %v3674_v54 = vmul.f32 -1.442695, %v3019_v32  ;;  %v3018_v25 = vadd.f32 %v2973_v47, %v5174_v56  ;;  %v2991_v11 = vadd.f32 %v4310_v12, %v2877_v31  ;;  %v2901_v9 = vadd.f32 %v4302_v23, %v2785_v63  ;;  %v4399_v63 = vld [vmem:[%s4534_s17 + $0x20] sm:$0xff] }
 0x3d4   : > { %v2984_v43 = vpop.f32.mrf.mxu1  ;;  %v2894_v29 = vpop.f32.mrf.mxu0 }
 0x3d5   : > { %4355 = vpow2.f32 %v3674_v54  ;;  %v3673_v24 = vmul.f32 -1.442695, %v3018_v25  ;;  %v3021_v42 = vadd.f32 %v2991_v11, %v5176_v21  ;;  %v2985_v45 = vadd.f32 %v2984_v43, %v2871_v58  ;;  %v3681_v11 = vld [vmem:[%s5525_s5 + $0x1] ss:$2 sm:$0x3] }
 0x3d6   : > { %v4313_v0 = vpop.f32.mrf.mxu1  ;;  %v2895_v62 = vadd.f32 %v2894_v29, %v2777_v40  ;;  %v3224_v54 = vlaneseq }
 0x3d7   : > { %4357 = vpow2.f32 %v3673_v24  ;;  %v3676_v41 = vmul.f32 -1.442695, %v3021_v42  ;;  %v3003_v56 = vadd.f32 %v4313_v0, %v2889_v53  ;;  %v3020_v33 = vadd.f32 %v2985_v45, %v5178_v61  ;;  %v4395_v24 = vld [vmem:[%s4534_s17] sm:$0xff]  ;;  %v4397_v0 = vld [vmem:[%s4534_s17 + $0x10] sm:$0xff] }
 0x3d8   : > { %v2996_v10 = vpop.f32.mrf.mxu1  ;;  %v5252_v25 = vshrl.u32 %v3224_v54, 7 }
 0x3d9   : > { %4359 = vpow2.f32 %v3676_v41  ;;  %v3023_v2 = vadd.f32 %v3003_v56, %v5180_v22  ;;  %v2997_v60 = vadd.f32 %v2996_v10, %v2883_v1  ;;  %v3675_v21 = vmul.f32 -1.442695, %v3020_v33  ;;  %v4398_v41 = vld [vmem:[%s4534_s17 + $0x18] sm:$0xff]  ;;  %v4400_v33 = vld [vmem:[%s4534_s17 + $0x28] sm:$0xff] }
 0x3da   : > { %v4316_v51 = vpop.f32.mrf.mxu1  ;;  %v5258_v6 = vsub.s32 0, %v5252_v25  ;;  %v3230_v19 = vsub.s32 1, %v5252_v25 }
 0x3db   : > { %v3678_v52 = vmul.f32 -1.442695, %v3023_v2  ;;  %v3022_v4 = vadd.f32 %v2997_v60, %v5182_v34  ;;  %4361 = vpow2.f32 %v3675_v21  ;;  %v3015_v26 = vadd.f32 %v4316_v51, %v2901_v9  ;;  %v4401_v51 = vld [vmem:[%s4534_s17 + $0x30] sm:$0xff] }
 0x3dc   : > { %v3008_v35 = vpop.f32.mrf.mxu1  ;;  %v5262_v38 = vrot.slane %v3681_v11, %v5258_v6  ;;  %v5266_v58 = vrot.slane %v3681_v11, %v3230_v19  ;;  %v4410_v11 = vld [vmem:[%s4534_s17 + $0x78] sm:$0xff] }
 0x3dd   : > { %4363 = vpow2.f32 %v3678_v52  ;;  %v3677_v39 = vmul.f32 -1.442695, %v3022_v4  ;;  %v3009_v36 = vadd.f32 %v3008_v35, %v2895_v62  ;;  %v3025_v49 = vadd.f32 %v3015_v26, %v5184_v7  ;;  %v4402_v52 = vld [vmem:[%s4534_s17 + $0x38] sm:$0xff]  ;;  %v4403_v35 = vld [vmem:[%s4534_s17 + $0x40] sm:$0xff] }
 0x3df   : > { %v3024_v61 = vadd.f32 %v3009_v36, %v5186_v48  ;;  %4365 = vpow2.f32 %v3677_v39  ;;  %v3680_v14 = vmul.f32 -1.442695, %v3025_v49  ;;  %v4404_v36 = vld [vmem:[%s4534_s17 + $0x48] sm:$0xff] }
 0x3e1   : > { %v3679_v22 = vmul.f32 -1.442695, %v3024_v61 }
 0x3e2   : > { %v4356_v37 = vpop.eup %4355 }
 0x3e3   : > { %v3051_v57 = vadd.f32 1.0, %v4356_v37  ;;  %4367 = vpow2.f32 %v3679_v22  ;;  %v4405_v37 = vld [vmem:[%s4534_s17 + $0x50] sm:$0xff] }
 0x3e4   : > { %v4358_v5 = vpop.eup %4357 }
 0x3e5   : > { %4369 = vrcp.f32 %v3051_v57  ;;  %v3050_v27 = vadd.f32 1.0, %v4358_v5  ;;  %v4406_v5 = vld [vmem:[%s4534_s17 + $0x58] sm:$0xff] }
 0x3e6   : > { %v4360_v34 = vpop.eup %4359 }
 0x3e7   : > { %4371 = vrcp.f32 %v3050_v27  ;;  %v3053_v55 = vadd.f32 1.0, %v4360_v34 }
 0x3e8   : > { %4373 = vpow2.f32 %v3680_v14  ;;  %v4362_v46 = vpop.eup %4361 }
 0x3e9   : > { %4375 = vrcp.f32 %v3053_v55  ;;  %v3052_v15 = vadd.f32 1.0, %v4362_v46  ;;  %v4407_v46 = vld [vmem:[%s4534_s17 + $0x60] sm:$0xff] }
 0x3ea   : > { %v4364_v59 = vpop.eup %4363 }
 0x3eb   : > { %4377 = vrcp.f32 %v3052_v15  ;;  %v3055_v48 = vadd.f32 1.0, %v4364_v59  ;;  %v4408_v15 = vld [vmem:[%s4534_s17 + $0x68] sm:$0xff] }
 0x3ec   : > { %v4366_v7 = vpop.eup %4365 }
 0x3ed   : > { %4379 = vrcp.f32 %v3055_v48  ;;  %v3054_v44 = vadd.f32 1.0, %v4366_v7 }
 0x3ef   : > { %4381 = vrcp.f32 %v3054_v44 }
 0x3f0   : > { %v4368_v28 = vpop.eup %4367 }
 0x3f1   : > { %v3056_v31 = vadd.f32 1.0, %v4368_v28 }
 0x3f2   : > { %v4370_v17 = vpop.eup %4369 }
 0x3f3   : > { %3081 = vperm.xlu1 %4354, %v4370_v17   ;;  %4383 = vrcp.f32 %v3056_v31 }
 0x3f4   : > { %v4372_v3 = vpop.eup %4371 }
 0x3f5   : > { %v4374_v30 = vpop.eup %4373  ;;  %3076 = vperm.xlu0 %4353, %v4372_v3  }
 0x3f6   : > { %v4376_v32 = vpop.eup %4375  ;;  %v3057_v47 = vadd.f32 1.0, %v4374_v30 }
 0x3f7   : > { %3091 = vperm.xlu1 %4354, %v4376_v32  }
 0x3f8   : > { %v4378_v13 = vpop.eup %4377  ;;  %4385 = vrcp.f32 %v3057_v47 }
 0x3f9   : > { %3291 = vrot.lane.b32.xlu0 %v5266_v58, %s4442_s18 }
 0x3fa   : > { %v4380_v18 = vpop.eup %4379 }
 0x3fb   : > { %3086 = vperm.xlu1 %4354, %v4378_v13  }
 0x3fc   : > { %v4382_v50 = vpop.eup %4381 }
 0x3ff   : > { %3101 = vperm.xlu1 %4354, %v4380_v18  }
 0x400   : > { %v4384_v12 = vpop.eup %4383 }
 0x403   : > { %3096 = vperm.xlu1 %4354, %v4382_v50  }
 0x405   : > { %v4386_v16 = vpop.eup %4385 }
 0x407   : > { %3106 = vperm.xlu1 %4354, %v4384_v12  }
 0x40b   : > { %3111 = vperm.xlu1 %4354, %v4386_v16   ;;  %v4409_v16 = vld [vmem:[%s4534_s17 + $0x70] sm:$0xff]  ;;  %s4443_s17 = smov 17  }
 0x40f   : > { %3289 = vrot.lane.b32.xlu1 %v5262_v38, %s4442_s18  ;;  %s3688_s18 = sld [smem:[#allocation3 + $0xc]] }
 0x46e   : > { %v3082_v23 = vpop.permute.xlu1 %3081 }
 0x46f   : > { %v5277_v1 = vmul.f32 %v4397_v0, %v3082_v23  ;;  %v5280_v56 = vmul.f32 %v4398_v41, %v3082_v23 }
 0x470   : > { %v3077_v43 = vpop.permute.xlu0 %3076 }
 0x471   : > { %v5271_v42 = vmul.f32 %v4395_v24, %v3077_v43  ;;  %v5274_v8 = vmul.f32 %v4396_v20, %v3077_v43 }
 0x472   : > { %v3092_v53 = vpop.permute.xlu1 %3091 }
 0x473   : > { %v3130_v40 = vadd.f32 %v5277_v1, %v5271_v42  ;;  %v3143_v2 = vadd.f32 %v5280_v56, %v5274_v8  ;;  %v5295_v62 = vmul.f32 %v4401_v51, %v3092_v53  ;;  %v5298_v4 = vmul.f32 %v4402_v52, %v3092_v53 }
 0x475   : > { %v3160_v44 = vmax.f32 %v5277_v1, %v5295_v62  ;;  %v3173_v17 = vmax.f32 %v5280_v56, %v5298_v4 }
 0x476   : > { %v3087_v45 = vpop.permute.xlu1 %3086 }
 0x477   : > { %v5283_v29 = vmul.f32 %v4399_v63, %v3087_v45  ;;  %v5286_v10 = vmul.f32 %v4400_v33, %v3087_v45 }
 0x479   : > { %v3131_v9 = vadd.f32 %v3130_v40, %v5283_v29  ;;  %v3144_v21 = vadd.f32 %v3143_v2, %v5286_v10  ;;  %v3159_v3 = vmax.f32 %v5271_v42, %v5283_v29  ;;  %v3172_v30 = vmax.f32 %v5274_v8, %v5286_v10 }
 0x47a   : > { %v3102_v60 = vpop.permute.xlu1 %3101 }
 0x47b   : > { %v3132_v49 = vadd.f32 %v3131_v9, %v5295_v62  ;;  %v3145_v22 = vadd.f32 %v3144_v21, %v5298_v4  ;;  %v5309_v57 = vmul.f32 %v4405_v37, %v3102_v60  ;;  %v5312_v14 = vmul.f32 %v4406_v5, %v3102_v60 }
 0x47d   : > { %v3162_v31 = vmax.f32 %v3160_v44, %v5309_v57  ;;  %v3175_v32 = vmax.f32 %v3173_v17, %v5312_v14 }
 0x47e   : > { %v3097_v26 = vpop.permute.xlu1 %3096 }
 0x47f   : > { %v5301_v39 = vmul.f32 %v4403_v35, %v3097_v26  ;;  %v5304_v61 = vmul.f32 %v4404_v36, %v3097_v26 }
 0x481   : > { %v3133_v27 = vadd.f32 %v3132_v49, %v5301_v39  ;;  %v3146_v34 = vadd.f32 %v3145_v22, %v5304_v61  ;;  %v3161_v47 = vmax.f32 %v3159_v3, %v5301_v39  ;;  %v3174_v13 = vmax.f32 %v3172_v30, %v5304_v61  ;;  %v3210_v3 = vld [vmem:[%s5525_s5] ss:$2 sm:$0x3] }
 0x482   : > { %v3107_v55 = vpop.permute.xlu1 %3106 }
 0x483   : > { %v5317_v59 = vmul.f32 %v4407_v46, %v3107_v55  ;;  %v5320_v48 = vmul.f32 %v4408_v15, %v3107_v55  ;;  %v3134_v7 = vadd.f32 %v3133_v27, %v5309_v57  ;;  %v3147_v28 = vadd.f32 %v3146_v34, %v5312_v14 }
 0x485   : > { %v3135_v50 = vadd.f32 %v3134_v7, %v5317_v59  ;;  %v3148_v12 = vadd.f32 %v3147_v28, %v5320_v48  ;;  %v3163_v43 = vmax.f32 %v3161_v47, %v5317_v59  ;;  %v3176_v53 = vmax.f32 %v3174_v13, %v5320_v48 }
 0x486   : > { %v3112_v18 = vpop.permute.xlu1 %3111  ;;  %v5358_v47 = vrot.slane %v3210_v3, %v5258_v6 }
 0x487   : > { %v5339_v54 = vmul.f32 %v4409_v16, %v3112_v18  ;;  %v5342_v23 = vmul.f32 %v4410_v11, %v3112_v18  ;;  %v3244_v16 = vstv %s3684_s25  ;;  %s3697_s25 = sld [smem:[#allocation3 + $0x8]] }
 0x489   : > { %v3136_v24 = vadd.f32 %v3135_v50, %v5339_v54  ;;  %v3149_v20 = vadd.f32 %v3148_v12, %v5342_v23  ;;  %v3164_v45 = vmax.f32 %v3162_v31, %v5339_v54  ;;  %v3177_v0 = vmax.f32 %v3175_v32, %v5342_v23 }
 0x48a   : > { %v5355_v32 = vrot.slane %v3210_v3, %v3230_v19  ;;  %v5368_v25 = vpop.permute.xlu1 %3289  ;;  %v5370_v19 = vpop.permute.xlu0 %3291  ;;  %v3240_v12 = vstv %s3683_s26  ;;  %s3698_s26 = sld [smem:[#allocation3 + $0x11]] }
 0x48b   : > { %v3137_v41 = vrot.slane %v3136_v24, 4  ;;  %v3150_v63 = vrot.slane %v3149_v20, 4  ;;  %v3165_v33 = vmax.f32 %v3163_v43, %v3164_v45  ;;  %v3178_v40 = vmax.f32 %v3176_v53, %v3177_v0 }
 0x48d   : > { %v3138_v2 = vadd.f32 %v3137_v41, %v3136_v24  ;;  %v3151_v60 = vadd.f32 %v3150_v63, %v3149_v20  ;;  %v3179_v9 = vrot.slane %v3178_v40, 4  ;;  %v3166_v21 = vrot.slane %v3165_v33, 4 }
 0x48f   : > { %v3180_v51 = vmax.f32 %v3178_v40, %v3179_v9  ;;  %v3167_v52 = vmax.f32 %v3165_v33, %v3166_v21  ;;  %v3152_v26 = vrot.slane %v3151_v60, 2  ;;  %v3139_v35 = vrot.slane %v3138_v2, 2 }
 0x490   : > { %v3360_v40 = vstv %s3689_s27  ;;  %s4452_s27 = smov 112  }
 0x491   : > { %v3181_v36 = vrot.slane %v3180_v51, 2  ;;  %v3168_v49 = vrot.slane %v3167_v52, 2  ;;  %v3153_v22 = vadd.f32 %v3152_v26, %v3151_v60  ;;  %v3140_v37 = vadd.f32 %v3139_v35, %v3138_v2 }
 0x492   : > { %v3364_v60 = vstv %s3690_s28  ;;  %s4453_s28 = smov 110  }
 0x493   : > { %v3182_v5 = vmax.f32 %v3180_v51, %v3181_v36  ;;  %v3169_v27 = vmax.f32 %v3167_v52, %v3168_v49  ;;  %v3154_v34 = vrot.slane %v3153_v22, 1  ;;  %v3141_v55 = vrot.slane %v3140_v37, 1 }
 0x495   : > { %v3183_v46 = vrot.slane %v3182_v5, 1  ;;  %v3170_v15 = vrot.slane %v3169_v27, 1  ;;  %v3155_v44 = vadd.f32 %v3154_v34, %v3153_v22  ;;  %v3142_v17 = vadd.f32 %v3141_v55, %v3140_v37 }
 0x496   : > { %v3269_v55 = vstv %s3685_s11  ;;  %s3539_s11 = sld [smem:[#allocation2]] }
 0x497   : > { %v3184_v7 = vmax.f32 %v3182_v5, %v3183_v46  ;;  %v3171_v28 = vmax.f32 %v3169_v27, %v3170_v15  ;;  %v3158_v30 = vmul.f32 0.015625, %v3155_v44  ;;  %v3157_v31 = vmul.f32 0.015625, %v3142_v17 }
 0x498   : > { %v3471_v5 = vstv %s3695_s10  ;;  %v3475_v27 = vstv %s5388_s9  ;;  %v3319_v46 = vstv %s3687_s7  ;;  %v3273_v17 = vstv %s3686_s13  ;;  %s4454_s9 = smov 96   ;;  %s4455_s10 = smov 94  }
 0x499   : > { %3202 = vrot.lane.b32.xlu0 %v3184_v7, %s4443_s17  ;;  %3200 = vrot.lane.b32.xlu1 %v3171_v28, %s4443_s17  ;;  %s5482_s13 = scalar_lea.vmem %s5528_s8, %s3703_s14 }
 0x49d   : > { %3189 = vrot.lane.b32.xlu0 %v3158_v30, %s4443_s17  ;;  %3187 = vrot.lane.b32.xlu1 %v3157_v31, %s4443_s17  ;;  %s4449_s17 = smov 111  }
 0x4a1   : > { %3332 = vrot.lane.b32.xlu0 %v5355_v32, %s4444_s21  ;;  %3330 = vrot.lane.b32.xlu1 %v5358_v47, %s4444_s21  ;;  %s4450_s21 = smov 95  }
 0x4a5   : > { %3402 = vrot.lane.b32.xlu0 %v5266_v58, %s4445_s22  ;;  %3400 = vrot.lane.b32.xlu1 %v5262_v38, %s4445_s22  ;;  %s5430_s22 = sld [smem:[#allocation3 + $0x6]] }
 0x4a9   : > { %3443 = vrot.lane.b32.xlu0 %v5355_v32, %s4446_s23  ;;  %3441 = vrot.lane.b32.xlu1 %v5358_v47, %s4446_s23  ;;  %s5439_s23 = sld [smem:[#allocation3 + $0xf]] }
 0x4ad   : > { %3513 = vrot.lane.b32.xlu0 %v5266_v58, %s4447_s24  ;;  %3511 = vrot.lane.b32.xlu1 %v5262_v38, %s4447_s24  ;;  %s4451_s24 = smov 126  }
 0x50b   : > { %v3201_v13 = vpop.permute.xlu1 %3200  ;;  %v3203_v18 = vpop.permute.xlu0 %3202 }
 0x50c   : > { %v5373_v50 = vsel %vm3191_vm4, 0.0, %v3201_v13  ;;  %v5376_v58 = vsel %vm3191_vm4, %v3201_v13, %v3203_v18  ;;  %v5391_v41 = vsel %vm3191_vm4, %v3203_v18, 0.0  ;;  %v3215_v18 = vstv %s5403_s16 }
 0x50d   : > { %v3245_v20 = vmul.f32 %v3244_v16, %v5373_v50  ;;  %v3246_v0 = vmul.f32 %v3244_v16, %v5376_v58  ;;  %v3247_v21 = vmul.f32 %v3244_v16, %v5391_v41  ;;  %v3365_v52 = vmul.f32 %v3364_v60, %v5373_v50 }
 0x50e   : > { %v3366_v22 = vmul.f32 %v3364_v60, %v5376_v58  ;;  %v3367_v37 = vmul.f32 %v3364_v60, %v5391_v41  ;;  %v3476_v28 = vmul.f32 %v3475_v27, %v5373_v50  ;;  %v3477_v3 = vmul.f32 %v3475_v27, %v5376_v58 }
 0x50f   : > { %v3188_v38 = vpop.permute.xlu1 %3187  ;;  %v3190_v11 = vpop.permute.xlu0 %3189 }
 0x510   : > { %v5379_v43 = vsel %vm3191_vm4, 0.0, %v3188_v38  ;;  %v5382_v53 = vsel %vm3191_vm4, %v3188_v38, %v3190_v11  ;;  %v5394_v63 = vsel %vm3191_vm4, %v3190_v11, 0.0  ;;  %v3323_v38 = vstv %s3688_s18 }
 0x511   : > { %v3241_v24 = vmul.f32 %v3240_v12, %v5379_v43  ;;  %v3242_v45 = vmul.f32 %v3240_v12, %v5382_v53  ;;  %v3243_v9 = vmul.f32 %v3240_v12, %v5394_v63  ;;  %v3361_v51 = vmul.f32 %v3360_v40, %v5379_v43 }
 0x512   : > { %v3362_v35 = vmul.f32 %v3360_v40, %v5382_v53  ;;  %v3363_v49 = vmul.f32 %v3360_v40, %v5394_v63  ;;  %v3472_v7 = vmul.f32 %v3471_v5, %v5379_v43  ;;  %v3473_v44 = vmul.f32 %v3471_v5, %v5382_v53 }
 0x513   : > { %v3248_v33 = vadd.f32 %v3245_v20, %v3241_v24  ;;  %v3249_v2 = vadd.f32 %v3246_v0, %v3242_v45  ;;  %v3250_v26 = vadd.f32 %v3247_v21, %v3243_v9  ;;  %v3368_v36 = vadd.f32 %v3365_v52, %v3361_v51 }
 0x514   : > { %v3369_v34 = vadd.f32 %v3366_v22, %v3362_v35  ;;  %v3370_v15 = vadd.f32 %v3367_v37, %v3363_v49  ;;  %v3270_v30 = vmul.f32 %v3269_v55, %v5379_v43  ;;  %v3479_v31 = vadd.f32 %v3476_v28, %v3472_v7  ;;  %v3331_v35 = vpop.permute.xlu1 %3330  ;;  %v3333_v49 = vpop.permute.xlu0 %3332 }
 0x515   : > { %3254 = vrot.lane.b32.xlu1 %v3248_v33, %s4448_s12  ;;  %3256 = vrot.lane.b32.xlu0 %v3249_v2, %s4448_s12  ;;  %v3474_v13 = vmul.f32 %v3471_v5, %v5394_v63  ;;  %v3218_v12 = vstv %s5400_s15  ;;  %v3320_v16 = vmul.f32 %v3319_v46, %v5379_v43  ;;  %v3480_v11 = vadd.f32 %v3477_v3, %v3473_v44 }
 0x516   : > { %v3274_v24 = vmul.f32 %v3273_v17, %v5373_v50  ;;  %v3478_v20 = vmul.f32 %v3475_v27, %v5391_v41  ;;  %v3271_v45 = vmul.f32 %v3269_v55, %v5382_v53  ;;  %v3275_v0 = vmul.f32 %v3273_v17, %v5376_v58 }
 0x517   : > { %v3272_v33 = vmul.f32 %v3269_v55, %v5394_v63  ;;  %v3276_v2 = vmul.f32 %v3273_v17, %v5391_v41  ;;  %v3216_v60 = vmul.f32 %v3215_v18, %v5379_v43  ;;  %v3219_v9 = vmul.f32 %v3218_v12, %v5373_v50 }
 0x518   : > { %v3277_v40 = vadd.f32 %v3274_v24, %v3270_v30  ;;  %v3481_v21 = vadd.f32 %v3478_v20, %v3474_v13  ;;  %v3278_v51 = vadd.f32 %v3275_v0, %v3271_v45  ;;  %v3220_v52 = vmul.f32 %v3218_v12, %v5376_v58 }
 0x519   : > { %3258 = vrot.lane.b32.xlu1 %v3250_v26, %s4448_s12  ;;  %3374 = vrot.lane.b32.xlu0 %v3368_v36, %s4449_s17  ;;  %v3217_v26 = vmul.f32 %v3215_v18, %v5382_v53  ;;  %v3321_v36 = vmul.f32 %v3319_v46, %v5382_v53  ;;  %v3279_v37 = vadd.f32 %v3276_v2, %v3272_v33  ;;  %v3389_v44 = vstv %s5414_s19 }
 0x51a   : > { %v3298_v22 = vmul.f32 %v5368_v25, %v3277_v40  ;;  %v5436_v5 = vadd.f32 %v3219_v9, %v3216_v60  ;;  %v3324_v27 = vmul.f32 %v3323_v38, %v5373_v50  ;;  %v3294_v55 = vsel %vm3293_vm5, %v5368_v25, %v5370_v19  ;;  %v3401_v25 = vpop.permute.xlu1 %3400 }
 0x51b   : > { %v3322_v28 = vmul.f32 %v3319_v46, %v5394_v63  ;;  %v3299_v17 = vmul.f32 %v3294_v55, %v3278_v51  ;;  %v3300_v30 = vmul.f32 %v5370_v19, %v3279_v37  ;;  %v3335_v13 = vsel %vm3334_vm6, %v3331_v35, %v3333_v49 }
 0x51c   : > { %v3327_v7 = vadd.f32 %v3324_v27, %v3320_v16  ;;  %v3393_v18 = vstv %s5421_s20  ;;  %v3391_v12 = vmul.f32 %v3389_v44, %v5382_v53  ;;  %v3430_v24 = vstv %s5430_s22 }
 0x51d   : > { %3376 = vrot.lane.b32.xlu1 %v3369_v34, %s4449_s17  ;;  %3378 = vrot.lane.b32.xlu0 %v3370_v15, %s4449_s17  ;;  %v5441_v34 = vadd.f32 %v3220_v52, %v3217_v26  ;;  %v3325_v15 = vmul.f32 %v3323_v38, %v5376_v58  ;;  %v3395_v45 = vmul.f32 %v3393_v18, %v5376_v58  ;;  %v3434_v0 = vstv %s5439_s23 }
 0x51e   : > { %v3339_v16 = vmul.f32 %v3331_v35, %v3327_v7  ;;  %v3390_v19 = vmul.f32 %v3389_v44, %v5379_v43  ;;  %v3431_v40 = vmul.f32 %v3430_v24, %v5379_v43  ;;  %v3394_v60 = vmul.f32 %v3393_v18, %v5373_v50  ;;  %v3442_v26 = vpop.permute.xlu1 %3441 }
 0x51f   : > { %v3328_v3 = vadd.f32 %v3325_v15, %v3321_v36  ;;  %v3398_v33 = vadd.f32 %v3395_v45, %v3391_v12  ;;  %v3392_v52 = vmul.f32 %v3389_v44, %v5394_v63  ;;  %v3433_v36 = vmul.f32 %v3430_v24, %v5394_v63 }
 0x520   : > { %v3397_v51 = vadd.f32 %v3394_v60, %v3390_v19  ;;  %v3396_v37 = vmul.f32 %v3393_v18, %v5391_v41  ;;  %v3437_v15 = vmul.f32 %v3434_v0, %v5391_v41  ;;  %v3504_v44 = vstv %s3698_s26 }
 0x521   : > { %3485 = vrot.lane.b32.xlu1 %v3479_v31, %s4450_s21  ;;  %3487 = vrot.lane.b32.xlu0 %v3480_v11, %s4450_s21  ;;  %v3326_v31 = vmul.f32 %v3323_v38, %v5391_v41  ;;  %v3403_v11 = vpop.permute.xlu0 %3402  ;;  %v3340_v20 = vmul.f32 %v3335_v13, %v3328_v3 }
 0x522   : > { %v3405_v38 = vsel %vm3404_vm7, %v3401_v25, %v3403_v11  ;;  %v3399_v7 = vadd.f32 %v3396_v37, %v3392_v52 }
 0x523   : > { %v3329_v46 = vadd.f32 %v3326_v31, %v3322_v28  ;;  %v3410_v9 = vmul.f32 %v3405_v38, %v3398_v33  ;;  %v3432_v28 = vmul.f32 %v3430_v24, %v5382_v53  ;;  %v3436_v31 = vmul.f32 %v3434_v0, %v5376_v58 }
 0x524   : > { %v3507_v38 = vmul.f32 %v3504_v44, %v5391_v41 }
 0x525   : > { %3489 = vrot.lane.b32.xlu1 %v3481_v21, %s4450_s21  ;;  %3304 = vrot.lane.b32.xlu0 %v3298_v22, %s4451_s24  ;;  %v3341_v2 = vmul.f32 %v3333_v49, %v3329_v46  ;;  %v3435_v21 = vmul.f32 %v3434_v0, %v5373_v50  ;;  %v3409_v22 = vmul.f32 %v3401_v25, %v3397_v51  ;;  %v3444_v27 = vpop.permute.xlu0 %3443  ;;  %v3500_v49 = vstv %s3697_s25 }
 0x526   : > { %v3501_v3 = vmul.f32 %v3500_v49, %v5379_v43  ;;  %v3446_v13 = vsel %vm3445_vm8, %v3442_v26, %v3444_v27  ;;  %v3505_v25 = vmul.f32 %v3504_v44, %v5373_v50  ;;  %v3439_v12 = vadd.f32 %v3436_v31, %v3432_v28 }
 0x527   : > { %v3438_v35 = vadd.f32 %v3435_v21, %v3431_v40  ;;  %v3502_v46 = vmul.f32 %v3500_v49, %v5382_v53  ;;  %v3503_v45 = vmul.f32 %v3500_v49, %v5394_v63 }
 0x528   : > { %v3451_v43 = vmul.f32 %v3446_v13, %v3439_v12 }
 0x529   : > { %3306 = vrot.lane.b32.xlu1 %v3299_v17, %s4451_s24  ;;  %3308 = vrot.lane.b32.xlu0 %v3300_v30, %s4451_s24  ;;  %v3450_v55 = vmul.f32 %v3442_v26, %v3438_v35  ;;  %v3440_v17 = vadd.f32 %v3437_v15, %v3433_v36  ;;  %v3411_v30 = vmul.f32 %v3403_v11, %v3399_v7  ;;  %v3514_v24 = vpop.permute.xlu0 %3513 }
 0x52a   : > { %v3506_v11 = vmul.f32 %v3504_v44, %v5376_v58  ;;  %v3510_v50 = vadd.f32 %v3507_v38, %v3503_v45  ;;  %v3235_v15 = vmul.f32 %v5355_v32, %v5441_v34 }
 0x52b   : > { %v3452_v18 = vmul.f32 %v3444_v27, %v3440_v17 }
 0x52c   : > { %v3509_v33 = vadd.f32 %v3506_v11, %v3502_v46  ;;  %v3522_v40 = vmul.f32 %v3514_v24, %v3510_v50 }
 0x52d   : > { %3345 = vrot.lane.b32.xlu1 %v3339_v16, %s4452_s27  ;;  %3347 = vrot.lane.b32.xlu0 %v3340_v20, %s4452_s27  ;;  %v3512_v16 = vpop.permute.xlu1 %3511  ;;  %v3508_v20 = vadd.f32 %v3505_v25, %v3501_v3 }
 0x52e   : > { %v3516_v0 = vsel %vm3515_vm9, %v3512_v16, %v3514_v24 }
 0x52f   : > { %v3520_v19 = vmul.f32 %v3512_v16, %v3508_v20  ;;  %v3521_v53 = vmul.f32 %v3516_v0, %v3509_v33 }
 0x531   : > { %3349 = vrot.lane.b32.xlu1 %v3341_v2, %s4452_s27  ;;  %3417 = vrot.lane.b32.xlu0 %v3410_v9, %s4453_s28 }
 0x535   : > { %3415 = vrot.lane.b32.xlu1 %v3409_v22, %s4453_s28  ;;  %3456 = vrot.lane.b32.xlu0 %v3450_v55, %s4454_s9  ;;  %v3234_v55 = vmul.f32 %v5358_v47, %v5436_v5 }
 0x539   : > { %3419 = vrot.lane.b32.xlu1 %v3411_v30, %s4453_s28  ;;  %3460 = vrot.lane.b32.xlu0 %v3452_v18, %s4454_s9 }
 0x53d   : > { %3458 = vrot.lane.b32.xlu1 %v3451_v43, %s4454_s9  ;;  %3526 = vrot.lane.b32.xlu0 %v3520_v19, %s4455_s10 }
 0x541   : > { %3528 = vrot.lane.b32.xlu1 %v3521_v53, %s4455_s10  ;;  %3530 = vrot.lane.b32.xlu0 %v3522_v40, %s4455_s10 }
 0x587   : > { %v3255_v2 = vpop.permute.xlu1 %3254  ;;  %v3257_v60 = vpop.permute.xlu0 %3256 }
 0x588   : > { %v3261_v27 = vsel %vm3260_vm10, %v3255_v2, %v3257_v60 }
 0x589   : > { %v3265_v3 = vadd.f32 %v3261_v27, %v3234_v55 }
 0x58b   : > { %v3259_v63 = vpop.permute.xlu1 %3258  ;;  %v3375_v9 = vpop.permute.xlu0 %3374 }
 0x58c   : > { %v3262_v49 = vsel %vm3260_vm10, %v3257_v60, %v3259_v63 }
 0x58d   : > { %v3266_v30 = vadd.f32 %v3262_v49, %v3235_v15 }
 0x58f   : > { %v3377_v21 = vpop.permute.xlu1 %3376  ;;  %v3379_v51 = vpop.permute.xlu0 %3378 }
 0x590   : > { %v3381_v5 = vsel %vm3380_vm13, %v3375_v9, %v3377_v21  ;;  %v3382_v32 = vsel %vm3380_vm13, %v3377_v21, %v3379_v51 }
 0x593   : > { %v3486_v58 = vpop.permute.xlu1 %3485  ;;  %v3488_v52 = vpop.permute.xlu0 %3487 }
 0x594   : > { %v3492_v60 = vsel %vm3491_vm0, %v3486_v58, %v3488_v52 }
 0x597   : > { %v3490_v26 = vpop.permute.xlu1 %3489  ;;  %v3305_v41 = vpop.permute.xlu0 %3304 }
 0x598   : > { %v3493_v63 = vsel %vm3491_vm0, %v3488_v52, %v3490_v26 }
 0x59b   : > { %v3307_v35 = vpop.permute.xlu1 %3306  ;;  %v3309_v36 = vpop.permute.xlu0 %3308 }
 0x59c   : > { %v3311_v28 = vsel %vm3310_vm11, %v3305_v41, %v3307_v35  ;;  %v3312_v44 = vsel %vm3310_vm11, %v3307_v35, %v3309_v36  ;;  %v3540_v41 = vstv %s3539_s11 }
 0x59d   : > { %v3315_v18 = vadd.f32 %v3311_v28, %v3265_v3  ;;  %v3316_v25 = vadd.f32 %v3312_v44, %v3266_v30 }
 0x59f   : > { %v3346_v22 = vpop.permute.xlu1 %3345  ;;  %v3348_v37 = vpop.permute.xlu0 %3347 }
 0x5a0   : > { %v3352_v31 = vsel %vm3351_vm12, %v3346_v22, %v3348_v37 }
 0x5a1   : > { %v3356_v46 = vadd.f32 %v3352_v31, %v3315_v18 }
 0x5a3   : > { %v3350_v7 = vpop.permute.xlu1 %3349  ;;  %v3418_v17 = vpop.permute.xlu0 %3417  ;;  %v3385_v43 = vadd.f32 %v3381_v5, %v3356_v46 }
 0x5a4   : > { %v3353_v13 = vsel %vm3351_vm12, %v3348_v37, %v3350_v7 }
 0x5a5   : > { %v3357_v24 = vadd.f32 %v3353_v13, %v3316_v25 }
 0x5a7   : > { %v3416_v12 = vpop.permute.xlu1 %3415  ;;  %v3457_v16 = vpop.permute.xlu0 %3456  ;;  %v3386_v11 = vadd.f32 %v3382_v32, %v3357_v24 }
 0x5a8   : > { %v3422_v34 = vsel %vm3421_vm14, %v3416_v12, %v3418_v17 }
 0x5a9   : > { %v3426_v19 = vadd.f32 %v3422_v34, %v3385_v43 }
 0x5ab   : > { %v3420_v47 = vpop.permute.xlu1 %3419  ;;  %v3461_v45 = vpop.permute.xlu0 %3460 }
 0x5ac   : > { %v3423_v20 = vsel %vm3421_vm14, %v3418_v17, %v3420_v47 }
 0x5ad   : > { %v3427_v38 = vadd.f32 %v3423_v20, %v3386_v11 }
 0x5af   : > { %v3459_v0 = vpop.permute.xlu1 %3458  ;;  %v3527_v53 = vpop.permute.xlu0 %3526 }
 0x5b0   : > { %v3463_v33 = vsel %vm3462_vm15, %v3457_v16, %v3459_v0  ;;  %v3464_v50 = vsel %vm3462_vm15, %v3459_v0, %v3461_v45 }
 0x5b1   : > { %v3467_v40 = vadd.f32 %v3463_v33, %v3426_v19  ;;  %v3468_v2 = vadd.f32 %v3464_v50, %v3427_v38 }
 0x5b3   : > { %v3529_v9 = vpop.permute.xlu1 %3528  ;;  %v3496_v21 = vadd.f32 %v3492_v60, %v3467_v40  ;;  %v3497_v51 = vadd.f32 %v3493_v63, %v3468_v2  ;;  %v3531_v36 = vpop.permute.xlu0 %3530 }
 0x5b4   : > { %v3533_v35 = vsel %vm3532_vm1, %v3527_v53, %v3529_v9  ;;  %v3534_v37 = vsel %vm3532_vm1, %v3529_v9, %v3531_v36 }
 0x5b5   : > { %v3537_v22 = vadd.f32 %v3533_v35, %v3496_v21  ;;  %v3538_v27 = vadd.f32 %v3534_v37, %v3497_v51 }
 0x5b7   : > { %v3541_v49 = vadd.f32 %v3540_v41, %v3537_v22  ;;  %v3542_v55 = vadd.f32 %v3540_v41, %v3538_v27 }
 0x5b9   : > { %v3699_v15 = vmul.f32 -1.442695, %v3541_v49  ;;  %v3700_v7 = vmul.f32 -1.442695, %v3542_v55 }
 0x5bb   : > { %4387 = vpow2.f32 %v3699_v15 }
 0x5bc   : > { %4389 = vpow2.f32 %v3700_v7 }
 0x5c8   : > { %v4388_v28 = vpop.eup %4387 }
 0x5c9   : > { %v4390_v44 = vpop.eup %4389  ;;  %v3549_v58 = vadd.f32 1.0, %v4388_v28 }
 0x5ca   : > { %v3550_v52 = vadd.f32 1.0, %v4390_v44 }
 0x5cb   : > { %4391 = vrcp.f32 %v3549_v58 }
 0x5cc   : > { %4393 = vrcp.f32 %v3550_v52 }
 0x5d8   : > { %v4392_v26 = vpop.eup %4391 }
 0x5d9   : > { %v4394_v17 = vpop.eup %4393  ;;  %v3558_v3 = vrot.slane %v4392_v26, %v5258_v6 }
 0x5da   : > { %v3562_v30 = vrot.slane %v4394_v17, %v5258_v6 }
 0x5db   : > { %v3563_v31 = vmul.f32 %v3558_v3, %v5271_v42  ;;  %v3565_v13 = vmul.f32 %v3558_v3, %v5277_v1  ;;  %v3567_v18 = vmul.f32 %v3558_v3, %v5283_v29  ;;  %v3569_v25 = vmul.f32 %v3558_v3, %v5295_v62 }
 0x5dc   : > { %v3571_v12 = vmul.f32 %v3558_v3, %v5301_v39  ;;  %v3573_v16 = vmul.f32 %v3558_v3, %v5309_v57  ;;  %v3575_v46 = vmul.f32 %v3558_v3, %v5317_v59  ;;  %v3577_v6 = vmul.f32 %v3558_v3, %v5339_v54 }
 0x5dd   : > { %3579 = vst [vmem:[%s5482_s13] sm:$0xff] %v3563_v31  ;;  %3581 = vst [vmem:[%s5482_s13 + $0x10] sm:$0xff] %v3565_v13  ;;  %v3564_v42 = vmul.f32 %v3562_v30, %v5274_v8  ;;  %v3566_v1 = vmul.f32 %v3562_v30, %v5280_v56  ;;  %v3568_v29 = vmul.f32 %v3562_v30, %v5286_v10 }
 0x5de   : > { %3583 = vst [vmem:[%s5482_s13 + $0x20] sm:$0xff] %v3567_v18  ;;  %3585 = vst [vmem:[%s5482_s13 + $0x30] sm:$0xff] %v3569_v25  ;;  %v3570_v62 = vmul.f32 %v3562_v30, %v5298_v4  ;;  %v3572_v39 = vmul.f32 %v3562_v30, %v5304_v61  ;;  %v3574_v57 = vmul.f32 %v3562_v30, %v5312_v14 }
 0x5df   : > { %3587 = vst [vmem:[%s5482_s13 + $0x40] sm:$0xff] %v3571_v12  ;;  %3589 = vst [vmem:[%s5482_s13 + $0x50] sm:$0xff] %v3573_v16  ;;  %v3576_v8 = vmul.f32 %v3562_v30, %v5320_v48  ;;  %v3578_v59 = vmul.f32 %v3562_v30, %v5342_v23 }
 0x5e0   : > { %3591 = vst [vmem:[%s5482_s13 + $0x60] sm:$0xff] %v3575_v46  ;;  %3593 = vst [vmem:[%s5482_s13 + $0x70] sm:$0xff] %v3577_v6 }
 0x5e1   : > { %3580 = vst [vmem:[%s5482_s13 + $0x8] sm:$0xff] %v3564_v42  ;;  %3582 = vst [vmem:[%s5482_s13 + $0x18] sm:$0xff] %v3566_v1 }
 0x5e2   : > { %3584 = vst [vmem:[%s5482_s13 + $0x28] sm:$0xff] %v3568_v29  ;;  %3586 = vst [vmem:[%s5482_s13 + $0x38] sm:$0xff] %v3570_v62 }
 0x5e3   : > { %3588 = vst [vmem:[%s5482_s13 + $0x48] sm:$0xff] %v3572_v39  ;;  %3590 = vst [vmem:[%s5482_s13 + $0x58] sm:$0xff] %v3574_v57 }
 0x5e4   : > { %3592 = vst [vmem:[%s5482_s13 + $0x68] sm:$0xff] %v3576_v8  ;;  %3594 = vst [vmem:[%s5482_s13 + $0x78] sm:$0xff] %v3578_v59 }
 0x5e5 PF: > { %s20_s29 = sadd.s32 1, %s4436_s29  }
 0x5e6   : > { %p17_p1 = scmp.ge.s32.totalorder %s20_s29, 4  }
 0x5e8   :  { %19 = sbr.rel (!%p17_p1) target bundleno = 3 (0x3), region = 88 }
 0x5ed   :  { %3616 = vsyncpa [#allocation4], 1 }
 0x5ee   :  { %3618 = vsyncpa [#allocation4 + $0x1], 1 }

</bundles_post_ra>
